<compile_context>
chip_gen: v7x
topology: tpu7x:2x2x1
jax: 0.10.0
libtpu: 0.0.40
codegen_flags: <defaults>
</compile_context>

<pallas_src>
import math
import jax
import jax.numpy as jnp
from jax.experimental import pallas as pl
from jax.experimental.pallas import tpu as pltpu

# ----------------------------- hyper-parameters -----------------------------
# args.* from the original script are undefined there; fixed deterministically:
K_PROP = 2        # args.k       (hub/authority propagation steps)
ALPHA = 0.8       # args.alpha
BETA = 0.2        # args.beta
LAMBDA_ = 0.5     # Metattack lambda_
INNER_LR = 0.1    # Metattack lr
MOMENTUM = 0.9    # Metattack momentum
SURR_LR = 0.01    # surrogate Adam lr
SURR_WD = 5e-4    # surrogate Adam weight decay

# ----------------------------- tiling helpers --------------------------------
_ROW_TARGETS = (512, 256, 128, 64, 32, 16, 8)   # dims that only need %8
_LANE_TARGETS = (512, 256, 128)                 # dims that need %128


def _tile(dim, targets):
    """Largest target tile that divides `dim`, else the full dim (always legal)."""
    for t in targets:
        if dim % t == 0:
            return t
    return dim


def _f32(x):
    # trace-time no-op when already f32 (never emits an extra HBM pass here)
    return x if x.dtype == jnp.float32 else x.astype(jnp.float32)


# ----------------------------- Pallas matmuls --------------------------------
def _mm_nn_kernel(a_ref, b_ref, o_ref, acc_ref):
    @pl.when(pl.program_id(2) == 0)
    def _():
        acc_ref[...] = jnp.zeros_like(acc_ref)
    acc_ref[...] += jnp.dot(a_ref[...], b_ref[...],
                            preferred_element_type=jnp.float32)

    @pl.when(pl.program_id(2) == pl.num_programs(2) - 1)
    def _():
        o_ref[...] = acc_ref[...].astype(o_ref.dtype)


def _mm_nt_kernel(a_ref, b_ref, o_ref, acc_ref):
    # computes a @ b.T : contraction over the LAST dim of both operands
    @pl.when(pl.program_id(2) == 0)
    def _():
        acc_ref[...] = jnp.zeros_like(acc_ref)
    acc_ref[...] += jax.lax.dot_general(
        a_ref[...], b_ref[...], (((1,), (1,)), ((), ())),
        preferred_element_type=jnp.float32)

    @pl.when(pl.program_id(2) == pl.num_programs(2) - 1)
    def _():
        o_ref[...] = acc_ref[...].astype(o_ref.dtype)


def _mm_tn_kernel(a_ref, b_ref, o_ref, acc_ref):
    # computes a.T @ b : contraction over the FIRST dim of both operands
    @pl.when(pl.program_id(2) == 0)
    def _():
        acc_ref[...] = jnp.zeros_like(acc_ref)
    acc_ref[...] += jax.lax.dot_general(
        a_ref[...], b_ref[...], (((0,), (0,)), ((), ())),
        preferred_element_type=jnp.float32)

    @pl.when(pl.program_id(2) == pl.num_programs(2) - 1)
    def _():
        o_ref[...] = acc_ref[...].astype(o_ref.dtype)


_MM_PARAMS = pltpu.CompilerParams(
    dimension_semantics=("parallel", "parallel", "arbitrary"))


def matmul_nn(a, b):
    """out = a @ b, tiled + accumulated on the MXU."""
    a, b = _f32(a), _f32(b)
    M, K = a.shape
    K2, N = b.shape
    assert K == K2
    tm = _tile(M, _ROW_TARGETS)
    tn = _tile(N, _LANE_TARGETS)
    tk = _tile(K, _LANE_TARGETS)
    return pl.pallas_call(
        _mm_nn_kernel,
        out_shape=jax.ShapeDtypeStruct((M, N), jnp.float32),
        grid=(M // tm, N // tn, K // tk),
        in_specs=[pl.BlockSpec((tm, tk), lambda i, j, k: (i, k)),
                  pl.BlockSpec((tk, tn), lambda i, j, k: (k, j))],
        out_specs=pl.BlockSpec((tm, tn), lambda i, j, k: (i, j)),
        scratch_shapes=[pltpu.VMEM((tm, tn), jnp.float32)],
        compiler_params=_MM_PARAMS,
        cost_estimate=pl.CostEstimate(
            flops=2 * M * N * K, transcendentals=0,
            bytes_accessed=4 * (M * K + K * N + M * N)),
    )(a, b)


def matmul_nt(a, b):
    """out = a @ b.T without materialising b.T in HBM."""
    a, b = _f32(a), _f32(b)
    M, C = a.shape
    P, C2 = b.shape
    assert C == C2
    tm = _tile(M, _ROW_TARGETS)
    tp = _tile(P, _LANE_TARGETS)
    tc = _tile(C, _LANE_TARGETS)
    return pl.pallas_call(
        _mm_nt_kernel,
        out_shape=jax.ShapeDtypeStruct((M, P), jnp.float32),
        grid=(M // tm, P // tp, C // tc),
        in_specs=[pl.BlockSpec((tm, tc), lambda i, j, k: (i, k)),
                  pl.BlockSpec((tp, tc), lambda i, j, k: (j, k))],
        out_specs=pl.BlockSpec((tm, tp), lambda i, j, k: (i, j)),
        scratch_shapes=[pltpu.VMEM((tm, tp), jnp.float32)],
        compiler_params=_MM_PARAMS,
        cost_estimate=pl.CostEstimate(
            flops=2 * M * P * C, transcendentals=0,
            bytes_accessed=4 * (M * C + P * C + M * P)),
    )(a, b)


def matmul_tn(a, b):
    """out = a.T @ b without materialising a.T in HBM."""
    a, b = _f32(a), _f32(b)
    C, M = a.shape
    C2, N = b.shape
    assert C == C2
    tm = _tile(M, _LANE_TARGETS)
    tn = _tile(N, _LANE_TARGETS)
    tc = _tile(C, _ROW_TARGETS)
    return pl.pallas_call(
        _mm_tn_kernel,
        out_shape=jax.ShapeDtypeStruct((M, N), jnp.float32),
        grid=(M // tm, N // tn, C // tc),
        in_specs=[pl.BlockSpec((tc, tm), lambda i, j, k: (k, i)),
                  pl.BlockSpec((tc, tn), lambda i, j, k: (k, j))],
        out_specs=pl.BlockSpec((tm, tn), lambda i, j, k: (i, j)),
        scratch_shapes=[pltpu.VMEM((tm, tn), jnp.float32)],
        compiler_params=_MM_PARAMS,
        cost_estimate=pl.CostEstimate(
            flops=2 * M * N * C, transcendentals=0,
            bytes_accessed=4 * (C * M + C * N + M * N)),
    )(a, b)


# differentiable wrappers -----------------------------------------------------
@jax.custom_vjp
def pmm(a, b):
    """Differentiable Pallas matmul a @ b (backward uses NT/TN kernels)."""
    return matmul_nn(a, b)


def _pmm_fwd(a, b):
    return matmul_nn(a, b), (a, b)


def _pmm_bwd(res, g):
    a, b = res
    return matmul_nt(g, b), matmul_tn(a, g)


pmm.defvjp(_pmm_fwd, _pmm_bwd)


@jax.custom_vjp
def pmm_nt(a, b):
    """Differentiable a @ b.T."""
    return matmul_nt(a, b)


def _pmm_nt_fwd(a, b):
    return matmul_nt(a, b), (a, b)


def _pmm_nt_bwd(res, g):
    a, b = res
    return matmul_nn(g, b), matmul_tn(g, a)


pmm_nt.defvjp(_pmm_nt_fwd, _pmm_nt_bwd)


@jax.custom_vjp
def pmm_tn(a, b):
    """Differentiable a.T @ b."""
    return matmul_tn(a, b)


def _pmm_tn_fwd(a, b):
    return matmul_tn(a, b), (a, b)


def _pmm_tn_bwd(res, g):
    a, b = res
    return matmul_nt(b, g), matmul_nn(a, g)


pmm_tn.defvjp(_pmm_tn_fwd, _pmm_tn_bwd)


# ----------------------------- log_softmax kernels ---------------------------
def _log_softmax_kernel(x_ref, o_ref):
    x = x_ref[...]
    m = jnp.max(x, axis=1, keepdims=True)
    e = jnp.exp(x - m)
    s = jnp.sum(e, axis=1, keepdims=True)
    o_ref[...] = x - m - jnp.log(s)


def _log_softmax_pallas(x):
    x = _f32(x)
    M, N = x.shape
    tm = _tile(M, _ROW_TARGETS)
    return pl.pallas_call(
        _log_softmax_kernel,
        out_shape=jax.ShapeDtypeStruct((M, N), jnp.float32),
        grid=(M // tm,),
        in_specs=[pl.BlockSpec((tm, N), lambda i: (i, 0))],
        out_specs=pl.BlockSpec((tm, N), lambda i: (i, 0)),
        compiler_params=pltpu.CompilerParams(
            dimension_semantics=("parallel",)),
    )(x)


def _log_softmax_bwd_kernel(y_ref, g_ref, o_ref):
    y = y_ref[...]
    g = g_ref[...]
    o_ref[...] = g - jnp.exp(y) * jnp.sum(g, axis=1, keepdims=True)


def _log_softmax_bwd_pallas(y, g):
    M, N = y.shape
    tm = _tile(M, _ROW_TARGETS)
    return pl.pallas_call(
        _log_softmax_bwd_kernel,
        out_shape=jax.ShapeDtypeStruct((M, N), jnp.float32),
        grid=(M // tm,),
        in_specs=[pl.BlockSpec((tm, N), lambda i: (i, 0)),
                  pl.BlockSpec((tm, N), lambda i: (i, 0))],
        out_specs=pl.BlockSpec((tm, N), lambda i: (i, 0)),
        compiler_params=pltpu.CompilerParams(
            dimension_semantics=("parallel",)),
    )(y, g)


@jax.custom_vjp
def plog_softmax(x):
    """Row-wise log_softmax (dim=1), Pallas fwd/bwd."""
    return _log_softmax_pallas(x)


def _pls_fwd(x):
    y = _log_softmax_pallas(x)
    return y, y


def _pls_bwd(y, g):
    return (_log_softmax_bwd_pallas(y, _f32(g)),)


plog_softmax.defvjp(_pls_fwd, _pls_bwd)


# ------------------ fused singleton-mask + score + argmax --------------------
def _fused_score_kernel(grad_ref, adj_ref, deg_ref, o_ref, best_v, best_i):
    i = pl.program_id(0)

    @pl.when(i == 0)
    def _():
        best_v[...] = jnp.full_like(best_v, -jnp.inf)
        best_i[...] = jnp.zeros_like(best_i)

    tm, n = adj_ref.shape
    adj = adj_ref[...]
    g = grad_ref[...] * (1.0 - 2.0 * adj)

    # singleton filter (modified_adj is symmetric by construction):
    #   entry (r,c) invalid iff edge present and either endpoint has degree 1.
    deg_col = deg_ref[...]                               # (1, n)  column degrees
    deg_row = jnp.sum(adj, axis=1, keepdims=True)        # (tm, 1) row degrees
    singleton = (adj > 0.5) & ((deg_col == 1.0) | (deg_row == 1.0))

    rows = i * tm + jax.lax.broadcasted_iota(jnp.int32, (tm, n), 0)
    cols = jax.lax.broadcasted_iota(jnp.int32, (tm, n), 1)
    invalid = singleton | (rows == cols)                 # kill the diagonal too

    # masked entries get -inf; strictly safer than the min-shift + zeroing of
    # the reference for the argmax selection and avoids 4 extra HBM passes.
    score = jnp.where(invalid, -jnp.inf, g)

    tile_max = jnp.max(jnp.max(score, axis=1, keepdims=True),
                       axis=0, keepdims=True)            # (1, 1)
    flat = rows * n + cols                               # global flat index
    cand = jnp.where(score == tile_max, flat, jnp.int32(2147483647))
    tile_arg = jnp.min(jnp.min(cand, axis=1, keepdims=True),
                       axis=0, keepdims=True)            # (1, 1) first max idx

    better = tile_max > best_v[...]
    best_v[...] = jnp.where(better, tile_max, best_v[...])
    best_i[...] = jnp.where(better, tile_arg, best_i[...])
    o_ref[...] = best_i[...]


def fused_score_argmax_pallas(adj_grad, modified_adj):
    """Returns the flat index of the best (row, col) perturbation."""
    adj_grad = _f32(adj_grad)
    modified_adj = _f32(modified_adj)
    n = adj_grad.shape[0]
    deg = jnp.sum(modified_adj, axis=0, keepdims=True)   # (1, n) single pass
    tm = _tile(n, _ROW_TARGETS)
    out = pl.pallas_call(
        _fused_score_kernel,
        out_shape=jax.ShapeDtypeStruct((1, 1), jnp.int32),
        grid=(n // tm,),
        in_specs=[pl.BlockSpec((tm, n), lambda i: (i, 0)),
                  pl.BlockSpec((tm, n), lambda i: (i, 0)),
                  pl.BlockSpec((1, n), lambda i: (0, 0))],
        out_specs=pl.BlockSpec((1, 1), lambda i: (0, 0)),
        scratch_shapes=[pltpu.VMEM((1, 1), jnp.float32),
                        pltpu.VMEM((1, 1), jnp.int32)],
        compiler_params=pltpu.CompilerParams(
            dimension_semantics=("arbitrary",)),
        cost_estimate=pl.CostEstimate(
            flops=6 * n * n, transcendentals=0,
            bytes_accessed=4 * (2 * n * n + n)),
    )(adj_grad, modified_adj, deg)
    return out[0, 0]


# ------------------------------- plain-JAX glue ------------------------------
def normalize_adj(adj):
    """utils.normalize_adj_tensor: D^-1/2 (A + I) D^-1/2 (differentiable)."""
    n = adj.shape[0]
    mx = adj + jnp.eye(n, dtype=adj.dtype)
    deg = jnp.sum(mx, axis=1)
    dinv = jnp.where(deg > 0, 1.0 / jnp.sqrt(deg), 0.0)
    return dinv[:, None] * mx * dinv[None, :]


def nll_loss(logprobs, labels):
    return -jnp.mean(logprobs[jnp.arange(labels.shape[0]), labels])


def uniform_init(key, shape, fan_out):
    stdv = 1.0 / math.sqrt(fan_out)
    return jax.random.uniform(key, shape, jnp.float32, -stdv, stdv)


# --------------------------- GANN surrogate model ----------------------------
def gann_forward(params, x, adj, training, key):
    # adj here is the normalised adjacency, which is symmetric, so adj.T == adj
    # (no HBM transpose pass for the hub step).
    authority, hub, inter = x, x, x
    for _ in range(K_PROP):
        authority = jnp.clip(pmm(adj, inter), 0.0, 1.0)
        inter = jnp.clip(ALPHA * authority + BETA * hub, 0.0, 1.0)
        hub = jnp.clip(pmm(adj, inter), 0.0, 1.0)
    x = ALPHA * authority + BETA * hub
    # layer1 (with_relu=False in BaseMeta)
    h = pmm(adj, pmm(x, params["w1"])) + params["b1"]
    if training:
        keep = jax.random.bernoulli(key, 0.5, h.shape).astype(h.dtype)
        h = h * keep / 0.5
    h = pmm(adj, pmm(h, params["w2"])) + params["b2"]
    return plog_softmax(h)


def train_surrogate(features, ori_adj, labels, idx_train, key,
                    nfeat, nhid, nclass, train_iters):
    adj_norm = normalize_adj(ori_adj)
    k1, k2, k3, k4 = jax.random.split(key, 4)
    params = {
        "w1": uniform_init(k1, (nfeat, nhid), nhid),
        "b1": uniform_init(k2, (nhid,), nhid),
        "w2": uniform_init(k3, (nhid, nclass), nclass),
        "b2": uniform_init(k4, (nclass,), nclass),
    }
    m = {k: jnp.zeros_like(v) for k, v in params.items()}
    v = {k: jnp.zeros_like(p) for k, p in params.items()}

    def loss_fn(p, dkey):
        out = gann_forward(p, features, adj_norm, True, dkey)
        return nll_loss(out[idx_train], labels[idx_train])

    @jax.jit
    def step(p, m, v, t, dkey):
        grads = jax.grad(loss_fn)(p, dkey)
        newp, newm, newv = {}, {}, {}
        for k in p:
            g = grads[k] + SURR_WD * p[k]          # Adam weight decay (L2)
            newm[k] = 0.9 * m[k] + 0.1 * g
            newv[k] = 0.999 * v[k] + 0.001 * g * g
            mhat = newm[k] / (1.0 - 0.9 ** t)
            vhat = newv[k] / (1.0 - 0.999 ** t)
            newp[k] = p[k] - SURR_LR * mhat / (jnp.sqrt(vhat) + 1e-8)
        return newp, newm, newv

    for i in range(train_iters):
        dkey = jax.random.fold_in(key, i)
        params, m, v = step(params, m, v, jnp.float32(i + 1), dkey)

    out = gann_forward(params, features, adj_norm, False, key)
    labels_self = jnp.argmax(out, axis=1).astype(labels.dtype)
    labels_self = labels_self.at[idx_train].set(labels[idx_train])
    return labels_self


# ------------------------ Metattack meta-gradient path -----------------------
def make_attack_step(features, ori_adj, labels, labels_self, idx_train,
                     idx_unlabeled, init_weights, nclass, train_iters):
    onehot = jax.nn.one_hot(labels, nclass, dtype=jnp.float32)
    train_mask = jnp.zeros((labels.shape[0],), jnp.float32)
    train_mask = train_mask.at[idx_train].set(1.0)
    n_train = float(idx_train.shape[0])

    def attack_loss(adj_changes):
        ad = adj_changes - jnp.diag(jnp.diag(adj_changes))
        adj_symm = jnp.clip(ad + ad.T, -1.0, 1.0)
        modified_adj = adj_symm + ori_adj
        adj_norm = normalize_adj(modified_adj)   # symmetric => adj_norm.T == adj_norm

        # inner_train (with_relu=False, with_bias=False): plain SGD+momentum on
        # the linear GCN; weight gradients are computed analytically so the
        # whole unrolled training stays first-order-differentiable w.r.t.
        # adj_changes (mirrors create_graph=True in torch).  All transposed
        # products go through the NT/TN Pallas kernels (no HBM transposes).
        weights = [w for w in init_weights]
        velocities = [jnp.zeros_like(w) for w in weights]
        for _ in range(train_iters):
            zs, h = [], features
            for w in weights:
                z = pmm(adj_norm, h)
                zs.append(z)
                h = pmm(z, w)
            probs = jnp.exp(plog_softmax(h))
            g = (probs - onehot) * train_mask[:, None] / n_train
            wgrads = [None] * len(weights)
            for i in reversed(range(len(weights))):
                wgrads[i] = pmm_tn(zs[i], g)              # zs[i].T @ g
                if i > 0:
                    g = pmm(adj_norm, pmm_nt(g, weights[i]))   # adj @ (g @ w.T)
            velocities = [MOMENTUM * v + gw for v, gw in zip(velocities, wgrads)]
            weights = [w - INNER_LR * v for w, v in zip(weights, velocities)]

        # get_meta_grad forward
        h = features
        for w in weights:
            h = pmm(pmm(adj_norm, h), w)
        output = plog_softmax(h)
        loss_labeled = nll_loss(output[idx_train], labels[idx_train])
        loss_unlabeled = nll_loss(output[idx_unlabeled],
                                  labels_self[idx_unlabeled])
        attack = LAMBDA_ * loss_labeled + (1.0 - LAMBDA_) * loss_unlabeled
        return attack, modified_adj

    return jax.jit(jax.value_and_grad(attack_loss, has_aux=True))


def metattack_forward(features, ori_adj, labels, idx_train, idx_unlabeled,
                      perturbations, *, hidden_sizes, nclass,
                      inner_train_iters, surrogate_iters, key):
    n = ori_adj.shape[0]
    nfeat = features.shape[1]

    labels_self = train_surrogate(features, ori_adj, labels, idx_train,
                                  jax.random.fold_in(key, 100),
                                  nfeat, hidden_sizes[0], nclass,
                                  surrogate_iters)

    # inner GCN weights (deterministic; torch re-randomizes each perturbation)
    wkeys = jax.random.split(jax.random.fold_in(key, 200),
                             len(hidden_sizes) + 1)
    sizes = [nfeat] + list(hidden_sizes) + [nclass]
    init_weights = [uniform_init(wkeys[i], (sizes[i], sizes[i + 1]),
                                 sizes[i + 1])
                    for i in range(len(sizes) - 1)]

    adj_changes = jnp.zeros((n, n), jnp.float32)
    attack_step = make_attack_step(features, ori_adj, labels, labels_self,
                                   idx_train, idx_unlabeled, init_weights,
                                   nclass, inner_train_iters)

    for _ in range(perturbations):
        (_, modified_adj), adj_grad = attack_step(adj_changes)
        # fused: singleton mask + meta-score + diag-zero + argmax, one pass.
        # TODO(synk): log-likelihood constraint (utils.likelihood_ratio_filter)
        # omitted (equivalent to ll_constraint=False).
        flat = fused_score_argmax_pallas(adj_grad, modified_adj)
        row_idx, col_idx = flat // n, flat % n
        val = -2.0 * modified_adj[row_idx, col_idx] + 1.0
        adj_changes = adj_changes.at[row_idx, col_idx].add(val)
        adj_changes = adj_changes.at[col_idx, row_idx].add(val)

    return adj_changes + ori_adj


# ------------------------------------ main -----------------------------------
if __name__ == "__main__":
    N, NFEAT, NHID, NCLASS = 32, 16, 16, 4
    PERTURBATIONS = 2
    INNER_TRAIN_ITERS = 4     # small demo-sized unrolled inner training
    SURROGATE_ITERS = 8       # small demo-sized surrogate training

    key = jax.random.PRNGKey(0)
    kf, ka, kl = jax.random.split(key, 3)

    features = jax.random.uniform(kf, (N, NFEAT), jnp.float32)
    upper = (jax.random.uniform(ka, (N, N)) < 0.15).astype(jnp.float32)
    upper = jnp.triu(upper, k=1)
    ori_adj = upper + upper.T                              # symmetric, 0 diag
    labels = jax.random.randint(kl, (N,), 0, NCLASS, jnp.int32)

    idx_train = jnp.arange(0, 8, dtype=jnp.int32)
    idx_val = jnp.arange(8, 16, dtype=jnp.int32)
    idx_test = jnp.arange(16, 32, dtype=jnp.int32)
    idx_unlabeled = jnp.union1d(idx_val, idx_test).astype(jnp.int32)

    out = metattack_forward(
        features, ori_adj, labels, idx_train, idx_unlabeled, PERTURBATIONS,
        hidden_sizes=[NHID], nclass=NCLASS,
        inner_train_iters=INNER_TRAIN_ITERS,
        surrogate_iters=SURROGATE_ITERS, key=key)

    out = jax.block_until_ready(out)
    assert out.shape == (N, N) and jnp.all(jnp.isfinite(out))
    print("KERNEL_OK")
</pallas_src>

<mosaic_0001>
module attributes {stable_mosaic.version = 11 : i64} {
  func.func @_mm_nn_kernel(%arg0: i32, %arg1: i32, %arg2: i32, %arg3: memref<32x32xf32, #tpu.memory_space<vmem>>, %arg4: memref<32x16xf32, #tpu.memory_space<vmem>>, %arg5: memref<32x16xf32, #tpu.memory_space<vmem>>, %arg6: memref<32x16xf32, #tpu.memory_space<vmem>>) attributes {dimension_semantics = [#tpu.dimension_semantics<parallel>, #tpu.dimension_semantics<parallel>, #tpu.dimension_semantics<arbitrary>], iteration_bounds = array<i64: 1, 1, 1>, scalar_prefetch = 0 : i64, scratch_operands = 1 : i64, tpu.core_type = #tpu.core_type<tc>, window_params = [{transform_indices = @transform_0, window_bounds = array<i64: 32, 32>}, {transform_indices = @transform_1, window_bounds = array<i64: 32, 16>}, {transform_indices = @transform_2, window_bounds = array<i64: 32, 16>}]} {
    %c0_i32 = arith.constant 0 : i32
    %0 = arith.cmpi eq, %arg2, %c0_i32 : i32
    %1 = arith.extui %0 : i1 to i32
    %c0_i32_0 = arith.constant 0 : i32
    %2 = arith.cmpi ne, %1, %c0_i32_0 : i32
    scf.if %2 {
      %cst_10 = arith.constant 0.000000e+00 : f32
      %12 = vector.broadcast %cst_10 : f32 to vector<32x16xf32>
      %c0_11 = arith.constant 0 : index
      %c0_12 = arith.constant 0 : index
      %13 = vector.load %arg6[%c0_11, %c0_12] : memref<32x16xf32, #tpu.memory_space<vmem>>, vector<32x16xf32>
      tpu.vector_store %arg6[%c0_11, %c0_12], %12 {strides = array<i32>} : memref<32x16xf32, #tpu.memory_space<vmem>>, vector<32x16xf32>,
    } else {
    }
    %c0 = arith.constant 0 : index
    %c0_1 = arith.constant 0 : index
    %3 = vector.load %arg6[%c0, %c0_1] : memref<32x16xf32, #tpu.memory_space<vmem>>, vector<32x16xf32>
    %c0_2 = arith.constant 0 : index
    %c0_3 = arith.constant 0 : index
    %4 = vector.load %arg3[%c0_2, %c0_3] : memref<32x32xf32, #tpu.memory_space<vmem>>, vector<32x32xf32>
    %c0_4 = arith.constant 0 : index
    %c0_5 = arith.constant 0 : index
    %5 = vector.load %arg4[%c0_4, %c0_5] : memref<32x16xf32, #tpu.memory_space<vmem>>, vector<32x16xf32>
    %cst = arith.constant dense<0.000000e+00> : vector<32x16xf32>
    %6 = tpu.matmul %4, %5, %cst {dimension_numbers = #tpu.dot_dimension_numbers<[1], [0], [0], [1], [0, 0, 1, 1], [], []>} : vector<32x32xf32>, vector<32x16xf32>, vector<32x16xf32> -> vector<32x16xf32>
    %7 = arith.addf %3, %6 : vector<32x16xf32>
    %c0_6 = arith.constant 0 : index
    %c0_7 = arith.constant 0 : index
    %8 = vector.load %arg6[%c0_6, %c0_7] : memref<32x16xf32, #tpu.memory_space<vmem>>, vector<32x16xf32>
    tpu.vector_store %arg6[%c0_6, %c0_7], %7 {strides = array<i32>} : memref<32x16xf32, #tpu.memory_space<vmem>>, vector<32x16xf32>,
    %c0_i32_8 = arith.constant 0 : i32
    %9 = arith.cmpi eq, %arg2, %c0_i32_8 : i32
    %10 = arith.extui %9 : i1 to i32
    %c0_i32_9 = arith.constant 0 : i32
    %11 = arith.cmpi ne, %10, %c0_i32_9 : i32
    scf.if %11 {
      %c0_10 = arith.constant 0 : index
      %c0_11 = arith.constant 0 : index
      %12 = vector.load %arg6[%c0_10, %c0_11] : memref<32x16xf32, #tpu.memory_space<vmem>>, vector<32x16xf32>
      %c0_12 = arith.constant 0 : index
      %c0_13 = arith.constant 0 : index
      %13 = vector.load %arg5[%c0_12, %c0_13] : memref<32x16xf32, #tpu.memory_space<vmem>>, vector<32x16xf32>
      tpu.vector_store %arg5[%c0_12, %c0_13], %12 {strides = array<i32>} : memref<32x16xf32, #tpu.memory_space<vmem>>, vector<32x16xf32>,
    } else {
    }
    return
  }
  func.func @transform_0(%arg0: i32, %arg1: i32, %arg2: i32) -> (i32, i32) {
    %c0_i32 = arith.constant 0 : i32
    return %arg0, %arg2 : i32, i32
  }
  func.func @transform_1(%arg0: i32, %arg1: i32, %arg2: i32) -> (i32, i32) {
    %c0_i32 = arith.constant 0 : i32
    return %arg2, %arg1 : i32, i32
  }
  func.func @transform_2(%arg0: i32, %arg1: i32, %arg2: i32) -> (i32, i32) {
    %c0_i32 = arith.constant 0 : i32
    return %arg0, %arg1 : i32, i32
  }
}

module attributes {stable_mosaic.version = 11 : i64} {
  func.func @_mm_nn_kernel(%arg0: i32, %arg1: i32, %arg2: i32, %arg3: memref<32x16xf32, #tpu.memory_space<vmem>>, %arg4: memref<16x4xf32, #tpu.memory_space<vmem>>, %arg5: memref<32x4xf32, #tpu.memory_space<vmem>>, %arg6: memref<32x4xf32, #tpu.memory_space<vmem>>) attributes {dimension_semantics = [#tpu.dimension_semantics<parallel>, #tpu.dimension_semantics<parallel>, #tpu.dimension_semantics<arbitrary>], iteration_bounds = array<i64: 1, 1, 1>, scalar_prefetch = 0 : i64, scratch_operands = 1 : i64, tpu.core_type = #tpu.core_type<tc>, window_params = [{transform_indices = @transform_0, window_bounds = array<i64: 32, 16>}, {transform_indices = @transform_1, window_bounds = array<i64: 16, 4>}, {transform_indices = @transform_2, window_bounds = array<i64: 32, 4>}]} {
    %c0_i32 = arith.constant 0 : i32
    %0 = arith.cmpi eq, %arg2, %c0_i32 : i32
    %1 = arith.extui %0 : i1 to i32
    %c0_i32_0 = arith.constant 0 : i32
    %2 = arith.cmpi ne, %1, %c0_i32_0 : i32
    scf.if %2 {
      %cst_10 = arith.constant 0.000000e+00 : f32
      %12 = vector.broadcast %cst_10 : f32 to vector<32x4xf32>
      %c0_11 = arith.constant 0 : index
      %c0_12 = arith.constant 0 : index
      %13 = vector.load %arg6[%c0_11, %c0_12] : memref<32x4xf32, #tpu.memory_space<vmem>>, vector<32x4xf32>
      tpu.vector_store %arg6[%c0_11, %c0_12], %12 {strides = array<i32>} : memref<32x4xf32, #tpu.memory_space<vmem>>, vector<32x4xf32>,
    } else {
    }
    %c0 = arith.constant 0 : index
    %c0_1 = arith.constant 0 : index
    %3 = vector.load %arg6[%c0, %c0_1] : memref<32x4xf32, #tpu.memory_space<vmem>>, vector<32x4xf32>
    %c0_2 = arith.constant 0 : index
    %c0_3 = arith.constant 0 : index
    %4 = vector.load %arg3[%c0_2, %c0_3] : memref<32x16xf32, #tpu.memory_space<vmem>>, vector<32x16xf32>
    %c0_4 = arith.constant 0 : index
    %c0_5 = arith.constant 0 : index
    %5 = vector.load %arg4[%c0_4, %c0_5] : memref<16x4xf32, #tpu.memory_space<vmem>>, vector<16x4xf32>
    %cst = arith.constant dense<0.000000e+00> : vector<32x4xf32>
    %6 = tpu.matmul %4, %5, %cst {dimension_numbers = #tpu.dot_dimension_numbers<[1], [0], [0], [1], [0, 0, 1, 1], [], []>} : vector<32x16xf32>, vector<16x4xf32>, vector<32x4xf32> -> vector<32x4xf32>
    %7 = arith.addf %3, %6 : vector<32x4xf32>
    %c0_6 = arith.constant 0 : index
    %c0_7 = arith.constant 0 : index
    %8 = vector.load %arg6[%c0_6, %c0_7] : memref<32x4xf32, #tpu.memory_space<vmem>>, vector<32x4xf32>
    tpu.vector_store %arg6[%c0_6, %c0_7], %7 {strides = array<i32>} : memref<32x4xf32, #tpu.memory_space<vmem>>, vector<32x4xf32>,
    %c0_i32_8 = arith.constant 0 : i32
    %9 = arith.cmpi eq, %arg2, %c0_i32_8 : i32
    %10 = arith.extui %9 : i1 to i32
    %c0_i32_9 = arith.constant 0 : i32
    %11 = arith.cmpi ne, %10, %c0_i32_9 : i32
    scf.if %11 {
      %c0_10 = arith.constant 0 : index
      %c0_11 = arith.constant 0 : index
      %12 = vector.load %arg6[%c0_10, %c0_11] : memref<32x4xf32, #tpu.memory_space<vmem>>, vector<32x4xf32>
      %c0_12 = arith.constant 0 : index
      %c0_13 = arith.constant 0 : index
      %13 = vector.load %arg5[%c0_12, %c0_13] : memref<32x4xf32, #tpu.memory_space<vmem>>, vector<32x4xf32>
      tpu.vector_store %arg5[%c0_12, %c0_13], %12 {strides = array<i32>} : memref<32x4xf32, #tpu.memory_space<vmem>>, vector<32x4xf32>,
    } else {
    }
    return
  }
  func.func @transform_0(%arg0: i32, %arg1: i32, %arg2: i32) -> (i32, i32) {
    %c0_i32 = arith.constant 0 : i32
    return %arg0, %arg2 : i32, i32
  }
  func.func @transform_1(%arg0: i32, %arg1: i32, %arg2: i32) -> (i32, i32) {
    %c0_i32 = arith.constant 0 : i32
    return %arg2, %arg1 : i32, i32
  }
  func.func @transform_2(%arg0: i32, %arg1: i32, %arg2: i32) -> (i32, i32) {
    %c0_i32 = arith.constant 0 : i32
    return %arg0, %arg1 : i32, i32
  }
}

module attributes {stable_mosaic.version = 11 : i64} {
  func.func @_mm_nn_kernel(%arg0: i32, %arg1: i32, %arg2: i32, %arg3: memref<32x16xf32, #tpu.memory_space<vmem>>, %arg4: memref<16x16xf32, #tpu.memory_space<vmem>>, %arg5: memref<32x16xf32, #tpu.memory_space<vmem>>, %arg6: memref<32x16xf32, #tpu.memory_space<vmem>>) attributes {dimension_semantics = [#tpu.dimension_semantics<parallel>, #tpu.dimension_semantics<parallel>, #tpu.dimension_semantics<arbitrary>], iteration_bounds = array<i64: 1, 1, 1>, scalar_prefetch = 0 : i64, scratch_operands = 1 : i64, tpu.core_type = #tpu.core_type<tc>, window_params = [{transform_indices = @transform_0, window_bounds = array<i64: 32, 16>}, {transform_indices = @transform_1, window_bounds = array<i64: 16, 16>}, {transform_indices = @transform_2, window_bounds = array<i64: 32, 16>}]} {
    %c0_i32 = arith.constant 0 : i32
    %0 = arith.cmpi eq, %arg2, %c0_i32 : i32
    %1 = arith.extui %0 : i1 to i32
    %c0_i32_0 = arith.constant 0 : i32
    %2 = arith.cmpi ne, %1, %c0_i32_0 : i32
    scf.if %2 {
      %cst_10 = arith.constant 0.000000e+00 : f32
      %12 = vector.broadcast %cst_10 : f32 to vector<32x16xf32>
      %c0_11 = arith.constant 0 : index
      %c0_12 = arith.constant 0 : index
      %13 = vector.load %arg6[%c0_11, %c0_12] : memref<32x16xf32, #tpu.memory_space<vmem>>, vector<32x16xf32>
      tpu.vector_store %arg6[%c0_11, %c0_12], %12 {strides = array<i32>} : memref<32x16xf32, #tpu.memory_space<vmem>>, vector<32x16xf32>,
    } else {
    }
    %c0 = arith.constant 0 : index
    %c0_1 = arith.constant 0 : index
    %3 = vector.load %arg6[%c0, %c0_1] : memref<32x16xf32, #tpu.memory_space<vmem>>, vector<32x16xf32>
    %c0_2 = arith.constant 0 : index
    %c0_3 = arith.constant 0 : index
    %4 = vector.load %arg3[%c0_2, %c0_3] : memref<32x16xf32, #tpu.memory_space<vmem>>, vector<32x16xf32>
    %c0_4 = arith.constant 0 : index
    %c0_5 = arith.constant 0 : index
    %5 = vector.load %arg4[%c0_4, %c0_5] : memref<16x16xf32, #tpu.memory_space<vmem>>, vector<16x16xf32>
    %cst = arith.constant dense<0.000000e+00> : vector<32x16xf32>
    %6 = tpu.matmul %4, %5, %cst {dimension_numbers = #tpu.dot_dimension_numbers<[1], [0], [0], [1], [0, 0, 1, 1], [], []>} : vector<32x16xf32>, vector<16x16xf32>, vector<32x16xf32> -> vector<32x16xf32>
    %7 = arith.addf %3, %6 : vector<32x16xf32>
    %c0_6 = arith.constant 0 : index
    %c0_7 = arith.constant 0 : index
    %8 = vector.load %arg6[%c0_6, %c0_7] : memref<32x16xf32, #tpu.memory_space<vmem>>, vector<32x16xf32>
    tpu.vector_store %arg6[%c0_6, %c0_7], %7 {strides = array<i32>} : memref<32x16xf32, #tpu.memory_space<vmem>>, vector<32x16xf32>,
    %c0_i32_8 = arith.constant 0 : i32
    %9 = arith.cmpi eq, %arg2, %c0_i32_8 : i32
    %10 = arith.extui %9 : i1 to i32
    %c0_i32_9 = arith.constant 0 : i32
    %11 = arith.cmpi ne, %10, %c0_i32_9 : i32
    scf.if %11 {
      %c0_10 = arith.constant 0 : index
      %c0_11 = arith.constant 0 : index
      %12 = vector.load %arg6[%c0_10, %c0_11] : memref<32x16xf32, #tpu.memory_space<vmem>>, vector<32x16xf32>
      %c0_12 = arith.constant 0 : index
      %c0_13 = arith.constant 0 : index
      %13 = vector.load %arg5[%c0_12, %c0_13] : memref<32x16xf32, #tpu.memory_space<vmem>>, vector<32x16xf32>
      tpu.vector_store %arg5[%c0_12, %c0_13], %12 {strides = array<i32>} : memref<32x16xf32, #tpu.memory_space<vmem>>, vector<32x16xf32>,
    } else {
    }
    return
  }
  func.func @transform_0(%arg0: i32, %arg1: i32, %arg2: i32) -> (i32, i32) {
    %c0_i32 = arith.constant 0 : i32
    return %arg0, %arg2 : i32, i32
  }
  func.func @transform_1(%arg0: i32, %arg1: i32, %arg2: i32) -> (i32, i32) {
    %c0_i32 = arith.constant 0 : i32
    return %arg2, %arg1 : i32, i32
  }
  func.func @transform_2(%arg0: i32, %arg1: i32, %arg2: i32) -> (i32, i32) {
    %c0_i32 = arith.constant 0 : i32
    return %arg0, %arg1 : i32, i32
  }
}

module attributes {stable_mosaic.version = 11 : i64} {
  func.func @_mm_nn_kernel(%arg0: i32, %arg1: i32, %arg2: i32, %arg3: memref<32x32xf32, #tpu.memory_space<vmem>>, %arg4: memref<32x4xf32, #tpu.memory_space<vmem>>, %arg5: memref<32x4xf32, #tpu.memory_space<vmem>>, %arg6: memref<32x4xf32, #tpu.memory_space<vmem>>) attributes {dimension_semantics = [#tpu.dimension_semantics<parallel>, #tpu.dimension_semantics<parallel>, #tpu.dimension_semantics<arbitrary>], iteration_bounds = array<i64: 1, 1, 1>, scalar_prefetch = 0 : i64, scratch_operands = 1 : i64, tpu.core_type = #tpu.core_type<tc>, window_params = [{transform_indices = @transform_0, window_bounds = array<i64: 32, 32>}, {transform_indices = @transform_1, window_bounds = array<i64: 32, 4>}, {transform_indices = @transform_2, window_bounds = array<i64: 32, 4>}]} {
    %c0_i32 = arith.constant 0 : i32
    %0 = arith.cmpi eq, %arg2, %c0_i32 : i32
    %1 = arith.extui %0 : i1 to i32
    %c0_i32_0 = arith.constant 0 : i32
    %2 = arith.cmpi ne, %1, %c0_i32_0 : i32
    scf.if %2 {
      %cst_10 = arith.constant 0.000000e+00 : f32
      %12 = vector.broadcast %cst_10 : f32 to vector<32x4xf32>
      %c0_11 = arith.constant 0 : index
      %c0_12 = arith.constant 0 : index
      %13 = vector.load %arg6[%c0_11, %c0_12] : memref<32x4xf32, #tpu.memory_space<vmem>>, vector<32x4xf32>
      tpu.vector_store %arg6[%c0_11, %c0_12], %12 {strides = array<i32>} : memref<32x4xf32, #tpu.memory_space<vmem>>, vector<32x4xf32>,
    } else {
    }
    %c0 = arith.constant 0 : index
    %c0_1 = arith.constant 0 : index
    %3 = vector.load %arg6[%c0, %c0_1] : memref<32x4xf32, #tpu.memory_space<vmem>>, vector<32x4xf32>
    %c0_2 = arith.constant 0 : index
    %c0_3 = arith.constant 0 : index
    %4 = vector.load %arg3[%c0_2, %c0_3] : memref<32x32xf32, #tpu.memory_space<vmem>>, vector<32x32xf32>
    %c0_4 = arith.constant 0 : index
    %c0_5 = arith.constant 0 : index
    %5 = vector.load %arg4[%c0_4, %c0_5] : memref<32x4xf32, #tpu.memory_space<vmem>>, vector<32x4xf32>
    %cst = arith.constant dense<0.000000e+00> : vector<32x4xf32>
    %6 = tpu.matmul %4, %5, %cst {dimension_numbers = #tpu.dot_dimension_numbers<[1], [0], [0], [1], [0, 0, 1, 1], [], []>} : vector<32x32xf32>, vector<32x4xf32>, vector<32x4xf32> -> vector<32x4xf32>
    %7 = arith.addf %3, %6 : vector<32x4xf32>
    %c0_6 = arith.constant 0 : index
    %c0_7 = arith.constant 0 : index
    %8 = vector.load %arg6[%c0_6, %c0_7] : memref<32x4xf32, #tpu.memory_space<vmem>>, vector<32x4xf32>
    tpu.vector_store %arg6[%c0_6, %c0_7], %7 {strides = array<i32>} : memref<32x4xf32, #tpu.memory_space<vmem>>, vector<32x4xf32>,
    %c0_i32_8 = arith.constant 0 : i32
    %9 = arith.cmpi eq, %arg2, %c0_i32_8 : i32
    %10 = arith.extui %9 : i1 to i32
    %c0_i32_9 = arith.constant 0 : i32
    %11 = arith.cmpi ne, %10, %c0_i32_9 : i32
    scf.if %11 {
      %c0_10 = arith.constant 0 : index
      %c0_11 = arith.constant 0 : index
      %12 = vector.load %arg6[%c0_10, %c0_11] : memref<32x4xf32, #tpu.memory_space<vmem>>, vector<32x4xf32>
      %c0_12 = arith.constant 0 : index
      %c0_13 = arith.constant 0 : index
      %13 = vector.load %arg5[%c0_12, %c0_13] : memref<32x4xf32, #tpu.memory_space<vmem>>, vector<32x4xf32>
      tpu.vector_store %arg5[%c0_12, %c0_13], %12 {strides = array<i32>} : memref<32x4xf32, #tpu.memory_space<vmem>>, vector<32x4xf32>,
    } else {
    }
    return
  }
  func.func @transform_0(%arg0: i32, %arg1: i32, %arg2: i32) -> (i32, i32) {
    %c0_i32 = arith.constant 0 : i32
    return %arg0, %arg2 : i32, i32
  }
  func.func @transform_1(%arg0: i32, %arg1: i32, %arg2: i32) -> (i32, i32) {
    %c0_i32 = arith.constant 0 : i32
    return %arg2, %arg1 : i32, i32
  }
  func.func @transform_2(%arg0: i32, %arg1: i32, %arg2: i32) -> (i32, i32) {
    %c0_i32 = arith.constant 0 : i32
    return %arg0, %arg1 : i32, i32
  }
}

module attributes {stable_mosaic.version = 11 : i64} {
  func.func @_log_softmax_kernel(%arg0: i32, %arg1: memref<32x4xf32, #tpu.memory_space<vmem>>, %arg2: memref<32x4xf32, #tpu.memory_space<vmem>>) attributes {dimension_semantics = [#tpu.dimension_semantics<parallel>], iteration_bounds = array<i64: 1>, scalar_prefetch = 0 : i64, scratch_operands = 0 : i64, tpu.core_type = #tpu.core_type<tc>, window_params = [{transform_indices = @transform_0, window_bounds = array<i64: 32, 4>}, {transform_indices = @transform_1, window_bounds = array<i64: 32, 4>}]} {
    %c0 = arith.constant 0 : index
    %c0_0 = arith.constant 0 : index
    %0 = vector.load %arg1[%c0, %c0_0] : memref<32x4xf32, #tpu.memory_space<vmem>>, vector<32x4xf32>
    %cst = arith.constant dense<0xFF800000> : vector<32xf32>
    %1 = vector.multi_reduction <maximumf>, %0, %cst [1] : vector<32x4xf32> to vector<32xf32>
    %2 = vector.shape_cast %1 : vector<32xf32> to vector<32x1xf32>
    %3 = vector.broadcast %2 : vector<32x1xf32> to vector<32x4xf32>
    %4 = arith.subf %0, %3 : vector<32x4xf32>
    %5 = math.exp %4 : vector<32x4xf32>
    %cst_1 = arith.constant dense<0.000000e+00> : vector<32xf32>
    %6 = vector.multi_reduction <add>, %5, %cst_1 [1] : vector<32x4xf32> to vector<32xf32>
    %7 = vector.shape_cast %6 : vector<32xf32> to vector<32x1xf32>
    %8 = vector.broadcast %2 : vector<32x1xf32> to vector<32x4xf32>
    %9 = arith.subf %0, %8 : vector<32x4xf32>
    %10 = math.log %7 : vector<32x1xf32>
    %11 = vector.broadcast %10 : vector<32x1xf32> to vector<32x4xf32>
    %12 = arith.subf %9, %11 : vector<32x4xf32>
    %c0_2 = arith.constant 0 : index
    %c0_3 = arith.constant 0 : index
    %13 = vector.load %arg2[%c0_2, %c0_3] : memref<32x4xf32, #tpu.memory_space<vmem>>, vector<32x4xf32>
    tpu.vector_store %arg2[%c0_2, %c0_3], %12 {strides = array<i32>} : memref<32x4xf32, #tpu.memory_space<vmem>>, vector<32x4xf32>,
    return
  }
  func.func @transform_0(%arg0: i32) -> (i32, i32) {
    %c0_i32 = arith.constant 0 : i32
    %c0_i32_0 = arith.constant 0 : i32
    return %arg0, %c0_i32 : i32, i32
  }
  func.func @transform_1(%arg0: i32) -> (i32, i32) {
    %c0_i32 = arith.constant 0 : i32
    %c0_i32_0 = arith.constant 0 : i32
    return %arg0, %c0_i32 : i32, i32
  }
}

module attributes {stable_mosaic.version = 11 : i64} {
  func.func @_log_softmax_bwd_kernel(%arg0: i32, %arg1: memref<32x4xf32, #tpu.memory_space<vmem>>, %arg2: memref<32x4xf32, #tpu.memory_space<vmem>>, %arg3: memref<32x4xf32, #tpu.memory_space<vmem>>) attributes {dimension_semantics = [#tpu.dimension_semantics<parallel>], iteration_bounds = array<i64: 1>, scalar_prefetch = 0 : i64, scratch_operands = 0 : i64, tpu.core_type = #tpu.core_type<tc>, window_params = [{transform_indices = @transform_0, window_bounds = array<i64: 32, 4>}, {transform_indices = @transform_1, window_bounds = array<i64: 32, 4>}, {transform_indices = @transform_2, window_bounds = array<i64: 32, 4>}]} {
    %c0 = arith.constant 0 : index
    %c0_0 = arith.constant 0 : index
    %0 = vector.load %arg1[%c0, %c0_0] : memref<32x4xf32, #tpu.memory_space<vmem>>, vector<32x4xf32>
    %c0_1 = arith.constant 0 : index
    %c0_2 = arith.constant 0 : index
    %1 = vector.load %arg2[%c0_1, %c0_2] : memref<32x4xf32, #tpu.memory_space<vmem>>, vector<32x4xf32>
    %2 = math.exp %0 : vector<32x4xf32>
    %cst = arith.constant dense<0.000000e+00> : vector<32xf32>
    %3 = vector.multi_reduction <add>, %1, %cst [1] : vector<32x4xf32> to vector<32xf32>
    %4 = vector.shape_cast %3 : vector<32xf32> to vector<32x1xf32>
    %5 = vector.broadcast %4 : vector<32x1xf32> to vector<32x4xf32>
    %6 = arith.mulf %2, %5 : vector<32x4xf32>
    %7 = arith.subf %1, %6 : vector<32x4xf32>
    %c0_3 = arith.constant 0 : index
    %c0_4 = arith.constant 0 : index
    %8 = vector.load %arg3[%c0_3, %c0_4] : memref<32x4xf32, #tpu.memory_space<vmem>>, vector<32x4xf32>
    tpu.vector_store %arg3[%c0_3, %c0_4], %7 {strides = array<i32>} : memref<32x4xf32, #tpu.memory_space<vmem>>, vector<32x4xf32>,
    return
  }
  func.func @transform_0(%arg0: i32) -> (i32, i32) {
    %c0_i32 = arith.constant 0 : i32
    %c0_i32_0 = arith.constant 0 : i32
    return %arg0, %c0_i32 : i32, i32
  }
  func.func @transform_1(%arg0: i32) -> (i32, i32) {
    %c0_i32 = arith.constant 0 : i32
    %c0_i32_0 = arith.constant 0 : i32
    return %arg0, %c0_i32 : i32, i32
  }
  func.func @transform_2(%arg0: i32) -> (i32, i32) {
    %c0_i32 = arith.constant 0 : i32
    %c0_i32_0 = arith.constant 0 : i32
    return %arg0, %c0_i32 : i32, i32
  }
}

module attributes {stable_mosaic.version = 11 : i64} {
  func.func @_mm_tn_kernel(%arg0: i32, %arg1: i32, %arg2: i32, %arg3: memref<32x16xf32, #tpu.memory_space<vmem>>, %arg4: memref<32x4xf32, #tpu.memory_space<vmem>>, %arg5: memref<16x4xf32, #tpu.memory_space<vmem>>, %arg6: memref<16x4xf32, #tpu.memory_space<vmem>>) attributes {dimension_semantics = [#tpu.dimension_semantics<parallel>, #tpu.dimension_semantics<parallel>, #tpu.dimension_semantics<arbitrary>], iteration_bounds = array<i64: 1, 1, 1>, scalar_prefetch = 0 : i64, scratch_operands = 1 : i64, tpu.core_type = #tpu.core_type<tc>, window_params = [{transform_indices = @transform_0, window_bounds = array<i64: 32, 16>}, {transform_indices = @transform_1, window_bounds = array<i64: 32, 4>}, {transform_indices = @transform_2, window_bounds = array<i64: 16, 4>}]} {
    %c0_i32 = arith.constant 0 : i32
    %0 = arith.cmpi eq, %arg2, %c0_i32 : i32
    %1 = arith.extui %0 : i1 to i32
    %c0_i32_0 = arith.constant 0 : i32
    %2 = arith.cmpi ne, %1, %c0_i32_0 : i32
    scf.if %2 {
      %cst_10 = arith.constant 0.000000e+00 : f32
      %12 = vector.broadcast %cst_10 : f32 to vector<16x4xf32>
      %c0_11 = arith.constant 0 : index
      %c0_12 = arith.constant 0 : index
      %13 = vector.load %arg6[%c0_11, %c0_12] : memref<16x4xf32, #tpu.memory_space<vmem>>, vector<16x4xf32>
      tpu.vector_store %arg6[%c0_11, %c0_12], %12 {strides = array<i32>} : memref<16x4xf32, #tpu.memory_space<vmem>>, vector<16x4xf32>,
    } else {
    }
    %c0 = arith.constant 0 : index
    %c0_1 = arith.constant 0 : index
    %3 = vector.load %arg6[%c0, %c0_1] : memref<16x4xf32, #tpu.memory_space<vmem>>, vector<16x4xf32>
    %c0_2 = arith.constant 0 : index
    %c0_3 = arith.constant 0 : index
    %4 = vector.load %arg3[%c0_2, %c0_3] : memref<32x16xf32, #tpu.memory_space<vmem>>, vector<32x16xf32>
    %c0_4 = arith.constant 0 : index
    %c0_5 = arith.constant 0 : index
    %5 = vector.load %arg4[%c0_4, %c0_5] : memref<32x4xf32, #tpu.memory_space<vmem>>, vector<32x4xf32>
    %cst = arith.constant dense<0.000000e+00> : vector<16x4xf32>
    %6 = tpu.matmul %4, %5, %cst {dimension_numbers = #tpu.dot_dimension_numbers<[0], [0], [1], [1], [0, 1, 1, 1], [], []>} : vector<32x16xf32>, vector<32x4xf32>, vector<16x4xf32> -> vector<16x4xf32>
    %7 = arith.addf %3, %6 : vector<16x4xf32>
    %c0_6 = arith.constant 0 : index
    %c0_7 = arith.constant 0 : index
    %8 = vector.load %arg6[%c0_6, %c0_7] : memref<16x4xf32, #tpu.memory_space<vmem>>, vector<16x4xf32>
    tpu.vector_store %arg6[%c0_6, %c0_7], %7 {strides = array<i32>} : memref<16x4xf32, #tpu.memory_space<vmem>>, vector<16x4xf32>,
    %c0_i32_8 = arith.constant 0 : i32
    %9 = arith.cmpi eq, %arg2, %c0_i32_8 : i32
    %10 = arith.extui %9 : i1 to i32
    %c0_i32_9 = arith.constant 0 : i32
    %11 = arith.cmpi ne, %10, %c0_i32_9 : i32
    scf.if %11 {
      %c0_10 = arith.constant 0 : index
      %c0_11 = arith.constant 0 : index
      %12 = vector.load %arg6[%c0_10, %c0_11] : memref<16x4xf32, #tpu.memory_space<vmem>>, vector<16x4xf32>
      %c0_12 = arith.constant 0 : index
      %c0_13 = arith.constant 0 : index
      %13 = vector.load %arg5[%c0_12, %c0_13] : memref<16x4xf32, #tpu.memory_space<vmem>>, vector<16x4xf32>
      tpu.vector_store %arg5[%c0_12, %c0_13], %12 {strides = array<i32>} : memref<16x4xf32, #tpu.memory_space<vmem>>, vector<16x4xf32>,
    } else {
    }
    return
  }
  func.func @transform_0(%arg0: i32, %arg1: i32, %arg2: i32) -> (i32, i32) {
    %c0_i32 = arith.constant 0 : i32
    return %arg2, %arg0 : i32, i32
  }
  func.func @transform_1(%arg0: i32, %arg1: i32, %arg2: i32) -> (i32, i32) {
    %c0_i32 = arith.constant 0 : i32
    return %arg2, %arg1 : i32, i32
  }
  func.func @transform_2(%arg0: i32, %arg1: i32, %arg2: i32) -> (i32, i32) {
    %c0_i32 = arith.constant 0 : i32
    return %arg0, %arg1 : i32, i32
  }
}

module attributes {stable_mosaic.version = 11 : i64} {
  func.func @_mm_tn_kernel(%arg0: i32, %arg1: i32, %arg2: i32, %arg3: memref<32x32xf32, #tpu.memory_space<vmem>>, %arg4: memref<32x4xf32, #tpu.memory_space<vmem>>, %arg5: memref<32x4xf32, #tpu.memory_space<vmem>>, %arg6: memref<32x4xf32, #tpu.memory_space<vmem>>) attributes {dimension_semantics = [#tpu.dimension_semantics<parallel>, #tpu.dimension_semantics<parallel>, #tpu.dimension_semantics<arbitrary>], iteration_bounds = array<i64: 1, 1, 1>, scalar_prefetch = 0 : i64, scratch_operands = 1 : i64, tpu.core_type = #tpu.core_type<tc>, window_params = [{transform_indices = @transform_0, window_bounds = array<i64: 32, 32>}, {transform_indices = @transform_1, window_bounds = array<i64: 32, 4>}, {transform_indices = @transform_2, window_bounds = array<i64: 32, 4>}]} {
    %c0_i32 = arith.constant 0 : i32
    %0 = arith.cmpi eq, %arg2, %c0_i32 : i32
    %1 = arith.extui %0 : i1 to i32
    %c0_i32_0 = arith.constant 0 : i32
    %2 = arith.cmpi ne, %1, %c0_i32_0 : i32
    scf.if %2 {
      %cst_10 = arith.constant 0.000000e+00 : f32
      %12 = vector.broadcast %cst_10 : f32 to vector<32x4xf32>
      %c0_11 = arith.constant 0 : index
      %c0_12 = arith.constant 0 : index
      %13 = vector.load %arg6[%c0_11, %c0_12] : memref<32x4xf32, #tpu.memory_space<vmem>>, vector<32x4xf32>
      tpu.vector_store %arg6[%c0_11, %c0_12], %12 {strides = array<i32>} : memref<32x4xf32, #tpu.memory_space<vmem>>, vector<32x4xf32>,
    } else {
    }
    %c0 = arith.constant 0 : index
    %c0_1 = arith.constant 0 : index
    %3 = vector.load %arg6[%c0, %c0_1] : memref<32x4xf32, #tpu.memory_space<vmem>>, vector<32x4xf32>
    %c0_2 = arith.constant 0 : index
    %c0_3 = arith.constant 0 : index
    %4 = vector.load %arg3[%c0_2, %c0_3] : memref<32x32xf32, #tpu.memory_space<vmem>>, vector<32x32xf32>
    %c0_4 = arith.constant 0 : index
    %c0_5 = arith.constant 0 : index
    %5 = vector.load %arg4[%c0_4, %c0_5] : memref<32x4xf32, #tpu.memory_space<vmem>>, vector<32x4xf32>
    %cst = arith.constant dense<0.000000e+00> : vector<32x4xf32>
    %6 = tpu.matmul %4, %5, %cst {dimension_numbers = #tpu.dot_dimension_numbers<[0], [0], [1], [1], [0, 1, 1, 1], [], []>} : vector<32x32xf32>, vector<32x4xf32>, vector<32x4xf32> -> vector<32x4xf32>
    %7 = arith.addf %3, %6 : vector<32x4xf32>
    %c0_6 = arith.constant 0 : index
    %c0_7 = arith.constant 0 : index
    %8 = vector.load %arg6[%c0_6, %c0_7] : memref<32x4xf32, #tpu.memory_space<vmem>>, vector<32x4xf32>
    tpu.vector_store %arg6[%c0_6, %c0_7], %7 {strides = array<i32>} : memref<32x4xf32, #tpu.memory_space<vmem>>, vector<32x4xf32>,
    %c0_i32_8 = arith.constant 0 : i32
    %9 = arith.cmpi eq, %arg2, %c0_i32_8 : i32
    %10 = arith.extui %9 : i1 to i32
    %c0_i32_9 = arith.constant 0 : i32
    %11 = arith.cmpi ne, %10, %c0_i32_9 : i32
    scf.if %11 {
      %c0_10 = arith.constant 0 : index
      %c0_11 = arith.constant 0 : index
      %12 = vector.load %arg6[%c0_10, %c0_11] : memref<32x4xf32, #tpu.memory_space<vmem>>, vector<32x4xf32>
      %c0_12 = arith.constant 0 : index
      %c0_13 = arith.constant 0 : index
      %13 = vector.load %arg5[%c0_12, %c0_13] : memref<32x4xf32, #tpu.memory_space<vmem>>, vector<32x4xf32>
      tpu.vector_store %arg5[%c0_12, %c0_13], %12 {strides = array<i32>} : memref<32x4xf32, #tpu.memory_space<vmem>>, vector<32x4xf32>,
    } else {
    }
    return
  }
  func.func @transform_0(%arg0: i32, %arg1: i32, %arg2: i32) -> (i32, i32) {
    %c0_i32 = arith.constant 0 : i32
    return %arg2, %arg0 : i32, i32
  }
  func.func @transform_1(%arg0: i32, %arg1: i32, %arg2: i32) -> (i32, i32) {
    %c0_i32 = arith.constant 0 : i32
    return %arg2, %arg1 : i32, i32
  }
  func.func @transform_2(%arg0: i32, %arg1: i32, %arg2: i32) -> (i32, i32) {
    %c0_i32 = arith.constant 0 : i32
    return %arg0, %arg1 : i32, i32
  }
}

module attributes {stable_mosaic.version = 11 : i64} {
  func.func @_mm_nt_kernel(%arg0: i32, %arg1: i32, %arg2: i32, %arg3: memref<32x4xf32, #tpu.memory_space<vmem>>, %arg4: memref<16x4xf32, #tpu.memory_space<vmem>>, %arg5: memref<32x16xf32, #tpu.memory_space<vmem>>, %arg6: memref<32x16xf32, #tpu.memory_space<vmem>>) attributes {dimension_semantics = [#tpu.dimension_semantics<parallel>, #tpu.dimension_semantics<parallel>, #tpu.dimension_semantics<arbitrary>], iteration_bounds = array<i64: 1, 1, 1>, scalar_prefetch = 0 : i64, scratch_operands = 1 : i64, tpu.core_type = #tpu.core_type<tc>, window_params = [{transform_indices = @transform_0, window_bounds = array<i64: 32, 4>}, {transform_indices = @transform_1, window_bounds = array<i64: 16, 4>}, {transform_indices = @transform_2, window_bounds = array<i64: 32, 16>}]} {
    %c0_i32 = arith.constant 0 : i32
    %0 = arith.cmpi eq, %arg2, %c0_i32 : i32
    %1 = arith.extui %0 : i1 to i32
    %c0_i32_0 = arith.constant 0 : i32
    %2 = arith.cmpi ne, %1, %c0_i32_0 : i32
    scf.if %2 {
      %cst_10 = arith.constant 0.000000e+00 : f32
      %12 = vector.broadcast %cst_10 : f32 to vector<32x16xf32>
      %c0_11 = arith.constant 0 : index
      %c0_12 = arith.constant 0 : index
      %13 = vector.load %arg6[%c0_11, %c0_12] : memref<32x16xf32, #tpu.memory_space<vmem>>, vector<32x16xf32>
      tpu.vector_store %arg6[%c0_11, %c0_12], %12 {strides = array<i32>} : memref<32x16xf32, #tpu.memory_space<vmem>>, vector<32x16xf32>,
    } else {
    }
    %c0 = arith.constant 0 : index
    %c0_1 = arith.constant 0 : index
    %3 = vector.load %arg6[%c0, %c0_1] : memref<32x16xf32, #tpu.memory_space<vmem>>, vector<32x16xf32>
    %c0_2 = arith.constant 0 : index
    %c0_3 = arith.constant 0 : index
    %4 = vector.load %arg3[%c0_2, %c0_3] : memref<32x4xf32, #tpu.memory_space<vmem>>, vector<32x4xf32>
    %c0_4 = arith.constant 0 : index
    %c0_5 = arith.constant 0 : index
    %5 = vector.load %arg4[%c0_4, %c0_5] : memref<16x4xf32, #tpu.memory_space<vmem>>, vector<16x4xf32>
    %cst = arith.constant dense<0.000000e+00> : vector<32x16xf32>
    %6 = tpu.matmul %4, %5, %cst {dimension_numbers = #tpu.dot_dimension_numbers<[1], [1], [0], [0], [0, 0, 1, 0], [], []>} : vector<32x4xf32>, vector<16x4xf32>, vector<32x16xf32> -> vector<32x16xf32>
    %7 = arith.addf %3, %6 : vector<32x16xf32>
    %c0_6 = arith.constant 0 : index
    %c0_7 = arith.constant 0 : index
    %8 = vector.load %arg6[%c0_6, %c0_7] : memref<32x16xf32, #tpu.memory_space<vmem>>, vector<32x16xf32>
    tpu.vector_store %arg6[%c0_6, %c0_7], %7 {strides = array<i32>} : memref<32x16xf32, #tpu.memory_space<vmem>>, vector<32x16xf32>,
    %c0_i32_8 = arith.constant 0 : i32
    %9 = arith.cmpi eq, %arg2, %c0_i32_8 : i32
    %10 = arith.extui %9 : i1 to i32
    %c0_i32_9 = arith.constant 0 : i32
    %11 = arith.cmpi ne, %10, %c0_i32_9 : i32
    scf.if %11 {
      %c0_10 = arith.constant 0 : index
      %c0_11 = arith.constant 0 : index
      %12 = vector.load %arg6[%c0_10, %c0_11] : memref<32x16xf32, #tpu.memory_space<vmem>>, vector<32x16xf32>
      %c0_12 = arith.constant 0 : index
      %c0_13 = arith.constant 0 : index
      %13 = vector.load %arg5[%c0_12, %c0_13] : memref<32x16xf32, #tpu.memory_space<vmem>>, vector<32x16xf32>
      tpu.vector_store %arg5[%c0_12, %c0_13], %12 {strides = array<i32>} : memref<32x16xf32, #tpu.memory_space<vmem>>, vector<32x16xf32>,
    } else {
    }
    return
  }
  func.func @transform_0(%arg0: i32, %arg1: i32, %arg2: i32) -> (i32, i32) {
    %c0_i32 = arith.constant 0 : i32
    return %arg0, %arg2 : i32, i32
  }
  func.func @transform_1(%arg0: i32, %arg1: i32, %arg2: i32) -> (i32, i32) {
    %c0_i32 = arith.constant 0 : i32
    return %arg1, %arg2 : i32, i32
  }
  func.func @transform_2(%arg0: i32, %arg1: i32, %arg2: i32) -> (i32, i32) {
    %c0_i32 = arith.constant 0 : i32
    return %arg0, %arg1 : i32, i32
  }
}

module attributes {stable_mosaic.version = 11 : i64} {
  func.func @_mm_tn_kernel(%arg0: i32, %arg1: i32, %arg2: i32, %arg3: memref<32x16xf32, #tpu.memory_space<vmem>>, %arg4: memref<32x16xf32, #tpu.memory_space<vmem>>, %arg5: memref<16x16xf32, #tpu.memory_space<vmem>>, %arg6: memref<16x16xf32, #tpu.memory_space<vmem>>) attributes {dimension_semantics = [#tpu.dimension_semantics<parallel>, #tpu.dimension_semantics<parallel>, #tpu.dimension_semantics<arbitrary>], iteration_bounds = array<i64: 1, 1, 1>, scalar_prefetch = 0 : i64, scratch_operands = 1 : i64, tpu.core_type = #tpu.core_type<tc>, window_params = [{transform_indices = @transform_0, window_bounds = array<i64: 32, 16>}, {transform_indices = @transform_1, window_bounds = array<i64: 32, 16>}, {transform_indices = @transform_2, window_bounds = array<i64: 16, 16>}]} {
    %c0_i32 = arith.constant 0 : i32
    %0 = arith.cmpi eq, %arg2, %c0_i32 : i32
    %1 = arith.extui %0 : i1 to i32
    %c0_i32_0 = arith.constant 0 : i32
    %2 = arith.cmpi ne, %1, %c0_i32_0 : i32
    scf.if %2 {
      %cst_10 = arith.constant 0.000000e+00 : f32
      %12 = vector.broadcast %cst_10 : f32 to vector<16x16xf32>
      %c0_11 = arith.constant 0 : index
      %c0_12 = arith.constant 0 : index
      %13 = vector.load %arg6[%c0_11, %c0_12] : memref<16x16xf32, #tpu.memory_space<vmem>>, vector<16x16xf32>
      tpu.vector_store %arg6[%c0_11, %c0_12], %12 {strides = array<i32>} : memref<16x16xf32, #tpu.memory_space<vmem>>, vector<16x16xf32>,
    } else {
    }
    %c0 = arith.constant 0 : index
    %c0_1 = arith.constant 0 : index
    %3 = vector.load %arg6[%c0, %c0_1] : memref<16x16xf32, #tpu.memory_space<vmem>>, vector<16x16xf32>
    %c0_2 = arith.constant 0 : index
    %c0_3 = arith.constant 0 : index
    %4 = vector.load %arg3[%c0_2, %c0_3] : memref<32x16xf32, #tpu.memory_space<vmem>>, vector<32x16xf32>
    %c0_4 = arith.constant 0 : index
    %c0_5 = arith.constant 0 : index
    %5 = vector.load %arg4[%c0_4, %c0_5] : memref<32x16xf32, #tpu.memory_space<vmem>>, vector<32x16xf32>
    %cst = arith.constant dense<0.000000e+00> : vector<16x16xf32>
    %6 = tpu.matmul %4, %5, %cst {dimension_numbers = #tpu.dot_dimension_numbers<[0], [0], [1], [1], [0, 1, 1, 1], [], []>} : vector<32x16xf32>, vector<32x16xf32>, vector<16x16xf32> -> vector<16x16xf32>
    %7 = arith.addf %3, %6 : vector<16x16xf32>
    %c0_6 = arith.constant 0 : index
    %c0_7 = arith.constant 0 : index
    %8 = vector.load %arg6[%c0_6, %c0_7] : memref<16x16xf32, #tpu.memory_space<vmem>>, vector<16x16xf32>
    tpu.vector_store %arg6[%c0_6, %c0_7], %7 {strides = array<i32>} : memref<16x16xf32, #tpu.memory_space<vmem>>, vector<16x16xf32>,
    %c0_i32_8 = arith.constant 0 : i32
    %9 = arith.cmpi eq, %arg2, %c0_i32_8 : i32
    %10 = arith.extui %9 : i1 to i32
    %c0_i32_9 = arith.constant 0 : i32
    %11 = arith.cmpi ne, %10, %c0_i32_9 : i32
    scf.if %11 {
      %c0_10 = arith.constant 0 : index
      %c0_11 = arith.constant 0 : index
      %12 = vector.load %arg6[%c0_10, %c0_11] : memref<16x16xf32, #tpu.memory_space<vmem>>, vector<16x16xf32>
      %c0_12 = arith.constant 0 : index
      %c0_13 = arith.constant 0 : index
      %13 = vector.load %arg5[%c0_12, %c0_13] : memref<16x16xf32, #tpu.memory_space<vmem>>, vector<16x16xf32>
      tpu.vector_store %arg5[%c0_12, %c0_13], %12 {strides = array<i32>} : memref<16x16xf32, #tpu.memory_space<vmem>>, vector<16x16xf32>,
    } else {
    }
    return
  }
  func.func @transform_0(%arg0: i32, %arg1: i32, %arg2: i32) -> (i32, i32) {
    %c0_i32 = arith.constant 0 : i32
    return %arg2, %arg0 : i32, i32
  }
  func.func @transform_1(%arg0: i32, %arg1: i32, %arg2: i32) -> (i32, i32) {
    %c0_i32 = arith.constant 0 : i32
    return %arg2, %arg1 : i32, i32
  }
  func.func @transform_2(%arg0: i32, %arg1: i32, %arg2: i32) -> (i32, i32) {
    %c0_i32 = arith.constant 0 : i32
    return %arg0, %arg1 : i32, i32
  }
}

module attributes {stable_mosaic.version = 11 : i64} {
  func.func @_mm_tn_kernel(%arg0: i32, %arg1: i32, %arg2: i32, %arg3: memref<32x32xf32, #tpu.memory_space<vmem>>, %arg4: memref<32x16xf32, #tpu.memory_space<vmem>>, %arg5: memref<32x16xf32, #tpu.memory_space<vmem>>, %arg6: memref<32x16xf32, #tpu.memory_space<vmem>>) attributes {dimension_semantics = [#tpu.dimension_semantics<parallel>, #tpu.dimension_semantics<parallel>, #tpu.dimension_semantics<arbitrary>], iteration_bounds = array<i64: 1, 1, 1>, scalar_prefetch = 0 : i64, scratch_operands = 1 : i64, tpu.core_type = #tpu.core_type<tc>, window_params = [{transform_indices = @transform_0, window_bounds = array<i64: 32, 32>}, {transform_indices = @transform_1, window_bounds = array<i64: 32, 16>}, {transform_indices = @transform_2, window_bounds = array<i64: 32, 16>}]} {
    %c0_i32 = arith.constant 0 : i32
    %0 = arith.cmpi eq, %arg2, %c0_i32 : i32
    %1 = arith.extui %0 : i1 to i32
    %c0_i32_0 = arith.constant 0 : i32
    %2 = arith.cmpi ne, %1, %c0_i32_0 : i32
    scf.if %2 {
      %cst_10 = arith.constant 0.000000e+00 : f32
      %12 = vector.broadcast %cst_10 : f32 to vector<32x16xf32>
      %c0_11 = arith.constant 0 : index
      %c0_12 = arith.constant 0 : index
      %13 = vector.load %arg6[%c0_11, %c0_12] : memref<32x16xf32, #tpu.memory_space<vmem>>, vector<32x16xf32>
      tpu.vector_store %arg6[%c0_11, %c0_12], %12 {strides = array<i32>} : memref<32x16xf32, #tpu.memory_space<vmem>>, vector<32x16xf32>,
    } else {
    }
    %c0 = arith.constant 0 : index
    %c0_1 = arith.constant 0 : index
    %3 = vector.load %arg6[%c0, %c0_1] : memref<32x16xf32, #tpu.memory_space<vmem>>, vector<32x16xf32>
    %c0_2 = arith.constant 0 : index
    %c0_3 = arith.constant 0 : index
    %4 = vector.load %arg3[%c0_2, %c0_3] : memref<32x32xf32, #tpu.memory_space<vmem>>, vector<32x32xf32>
    %c0_4 = arith.constant 0 : index
    %c0_5 = arith.constant 0 : index
    %5 = vector.load %arg4[%c0_4, %c0_5] : memref<32x16xf32, #tpu.memory_space<vmem>>, vector<32x16xf32>
    %cst = arith.constant dense<0.000000e+00> : vector<32x16xf32>
    %6 = tpu.matmul %4, %5, %cst {dimension_numbers = #tpu.dot_dimension_numbers<[0], [0], [1], [1], [0, 1, 1, 1], [], []>} : vector<32x32xf32>, vector<32x16xf32>, vector<32x16xf32> -> vector<32x16xf32>
    %7 = arith.addf %3, %6 : vector<32x16xf32>
    %c0_6 = arith.constant 0 : index
    %c0_7 = arith.constant 0 : index
    %8 = vector.load %arg6[%c0_6, %c0_7] : memref<32x16xf32, #tpu.memory_space<vmem>>, vector<32x16xf32>
    tpu.vector_store %arg6[%c0_6, %c0_7], %7 {strides = array<i32>} : memref<32x16xf32, #tpu.memory_space<vmem>>, vector<32x16xf32>,
    %c0_i32_8 = arith.constant 0 : i32
    %9 = arith.cmpi eq, %arg2, %c0_i32_8 : i32
    %10 = arith.extui %9 : i1 to i32
    %c0_i32_9 = arith.constant 0 : i32
    %11 = arith.cmpi ne, %10, %c0_i32_9 : i32
    scf.if %11 {
      %c0_10 = arith.constant 0 : index
      %c0_11 = arith.constant 0 : index
      %12 = vector.load %arg6[%c0_10, %c0_11] : memref<32x16xf32, #tpu.memory_space<vmem>>, vector<32x16xf32>
      %c0_12 = arith.constant 0 : index
      %c0_13 = arith.constant 0 : index
      %13 = vector.load %arg5[%c0_12, %c0_13] : memref<32x16xf32, #tpu.memory_space<vmem>>, vector<32x16xf32>
      tpu.vector_store %arg5[%c0_12, %c0_13], %12 {strides = array<i32>} : memref<32x16xf32, #tpu.memory_space<vmem>>, vector<32x16xf32>,
    } else {
    }
    return
  }
  func.func @transform_0(%arg0: i32, %arg1: i32, %arg2: i32) -> (i32, i32) {
    %c0_i32 = arith.constant 0 : i32
    return %arg2, %arg0 : i32, i32
  }
  func.func @transform_1(%arg0: i32, %arg1: i32, %arg2: i32) -> (i32, i32) {
    %c0_i32 = arith.constant 0 : i32
    return %arg2, %arg1 : i32, i32
  }
  func.func @transform_2(%arg0: i32, %arg1: i32, %arg2: i32) -> (i32, i32) {
    %c0_i32 = arith.constant 0 : i32
    return %arg0, %arg1 : i32, i32
  }
}

</mosaic_0001>

<bundles_post_ra>
// kernel: jvp__.9
= control target key start
LH: loop header
LB: loop body
LE: loop exit
PB: predicated region body
PF: predicated region fallthrough
CT: control target
= control target key end

     0   :  { %vm32_vm0 = vcmask 261120   ;;  %vm15_vm1 = vcmask 130048   ;;  %v193_v3 = vmov 0.0   ;;  %s261_s1 = inlined_call_operand.vmem [shape: f32[32,16], index: 1, kind: input, shape index: {}]   ;;  %s262_s0 = inlined_call_operand.vmem [shape: f32[32,32], index: 0, kind: input, shape index: {}]   ;;  %s263_s2 = inlined_call_operand.vmem [shape: f32[32,16], index: 2, kind: output, shape index: {}]  }
   0x1   :  { %v28_v0 = vld [vmem:[%s261_s1] sm:$0xff]  ;;  %v29_v1 = vld [vmem:[%s261_s1 + $0x8] sm:$0xff]  ;;  %v30_v2 = vld [vmem:[%s261_s1 + $0x10] sm:$0xff]  ;;  %17 = vst.msk [vmem:[#allocation2 + $0x8] sm:$0xff] %vm15_vm1, %v193_v3 }
   0x2   :  { %16 = vst.msk [vmem:[#allocation2] sm:$0xff] %vm15_vm1, %v193_v3  ;;  %18 = vst.msk [vmem:[#allocation2 + $0x10] sm:$0xff] %vm15_vm1, %v193_v3  ;;  %v180_v4 = vpack.c.bf16 %v29_v1, %v28_v0  ;;  %v31_v5 = vld [vmem:[%s261_s1 + $0x18] sm:$0xff]  ;;  %v24_v6 = vld [vmem:[%s262_s0] sm:$0xff] }
   0x3   :  { %19 = vst.msk [vmem:[#allocation2 + $0x18] sm:$0xff] %vm15_vm1, %v193_v3  ;;  %v26_v7 = vld [vmem:[%s262_s0 + $0x10] sm:$0xff]  ;;  %v184_v8 = vpack.c.bf16 %v31_v5, %v30_v2  ;;  %174 = vmatprep.mubr.msk.f32.mxu0 %vm32_vm0, %v24_v6  ;;  %v25_v9 = vld [vmem:[%s262_s0 + $0x8] sm:$0xff]  ;;  %v27_v10 = vld [vmem:[%s262_s0 + $0x18] sm:$0xff] }
   0x4   :  { %177 = vmatprep.mubr.msk.f32.mxu1 %vm32_vm0, %v26_v7  ;;  %181 = vmatprep.subr.bf16.mxu0 %v180_v4 }
   0x5   :  { %188 = vmatprep.subr.bf16.mxu1 %v180_v4  ;;  %183 = vmatpush3.bf16.msra.mxu0 %v180_v4 }
   0x6   :  { %190 = vmatpush3.bf16.msra.mxu1 %v180_v4  ;;  %185 = vmatprep.subr.bf16.mxu0 %v184_v8 }
   0x7   :  { %189 = vmatprep.subr.bf16.mxu1 %v184_v8 }
   0x8   :  { %v21_v11 = vld [vmem:[#allocation2 + $0x8] sm:$0xff] }
   0x9   :  { %187 = vmatpush3.bf16.msra.mxu0 %v184_v8  ;;  %v20_v13 = vld [vmem:[#allocation2] sm:$0xff]  ;;  %v22_v14 = vld [vmem:[#allocation2 + $0x10] sm:$0xff] }
   0xa   :  { %191 = vmatpush3.bf16.msra.mxu1 %v184_v8  ;;  %v23_v12 = vld [vmem:[#allocation2 + $0x18] sm:$0xff] }
   0xc   :  { %175 = vmatmul.mubr.msk.f32.vlgmr.msra.gmra.mrb[0].mxu0 %vm32_vm0, %v25_v9 }
   0xd   :  { %178 = vmatmul.mubr.msk.f32.vlgmr.msra.gmra.mrb[0].mxu1 %vm32_vm0, %v27_v10 }
  0xdf   :  { %v176_v15 = vpop.f32.mrb[0].mxu0 }
  0xe0   :  { %v179_v16 = vpop.f32.mrb[0].mxu1  ;;  %v131_v17 = vadd.f32 %v176_v15, %v21_v11  ;;  %v111_v19 = vpop.f32.mrb[1].mxu0 }
  0xe1   :  { %v133_v18 = vadd.f32 %v179_v16, %v23_v12  ;;  %v121_v20 = vpop.f32.mrb[1].mxu1  ;;  %v130_v21 = vadd.f32 %v111_v19, %v20_v13 }
  0xe2   :  { %v132_v22 = vadd.f32 %v121_v20, %v22_v14  ;;  %136 = vst.msk [vmem:[#allocation2 + $0x8] sm:$0xff] %vm15_vm1, %v131_v17 }
  0xe3   :  { %138 = vst.msk [vmem:[#allocation2 + $0x18] sm:$0xff] %vm15_vm1, %v133_v18  ;;  %135 = vst.msk [vmem:[#allocation2] sm:$0xff] %vm15_vm1, %v130_v21 }
  0xe4   :  { %137 = vst.msk [vmem:[#allocation2 + $0x10] sm:$0xff] %vm15_vm1, %v132_v22 }
  0xe9   :  { %v143_v23 = vld [vmem:[#allocation2 + $0x8] sm:$0xff] }
  0xea   :  { %v145_v24 = vld [vmem:[#allocation2 + $0x18] sm:$0xff]  ;;  %147 = vst.msk [vmem:[%s263_s2 + $0x8] sm:$0xff] %vm15_vm1, %v143_v23  ;;  %v142_v25 = vld [vmem:[#allocation2] sm:$0xff] }
  0xeb   :  { %149 = vst.msk [vmem:[%s263_s2 + $0x18] sm:$0xff] %vm15_vm1, %v145_v24  ;;  %v144_v26 = vld [vmem:[#allocation2 + $0x10] sm:$0xff]  ;;  %146 = vst.msk [vmem:[%s263_s2] sm:$0xff] %vm15_vm1, %v142_v25 }
  0xec   :  { %148 = vst.msk [vmem:[%s263_s2 + $0x10] sm:$0xff] %vm15_vm1, %v144_v26 }

// kernel: jvp__.14
= control target key start
LH: loop header
LB: loop body
LE: loop exit
PB: predicated region body
PF: predicated region fallthrough
CT: control target
= control target key end

     0   :  { %vm30_vm0 = vcmask 130048   ;;  %vm15_vm1 = vcmask 31744   ;;  %v179_v3 = vmov 0.0   ;;  %s241_s1 = inlined_call_operand.vmem [shape: f32[16,4], index: 1, kind: input, shape index: {}]   ;;  %s242_s0 = inlined_call_operand.vmem [shape: f32[32,16], index: 0, kind: input, shape index: {}]   ;;  %s243_s2 = inlined_call_operand.vmem [shape: f32[32,4], index: 2, kind: output, shape index: {}]  }
   0x1   :  { %v28_v0 = vld [vmem:[%s241_s1] sm:$0xff]  ;;  %v29_v1 = vld [vmem:[%s241_s1 + $0x8] sm:$0xff]  ;;  %17 = vst.msk [vmem:[#allocation2 + $0x8] sm:$0xff] %vm15_vm1, %v179_v3  ;;  %16 = vst.msk [vmem:[#allocation2] sm:$0xff] %vm15_vm1, %v179_v3 }
   0x2   :  { %v24_v2 = vld [vmem:[%s242_s0] sm:$0xff]  ;;  %18 = vst.msk [vmem:[#allocation2 + $0x10] sm:$0xff] %vm15_vm1, %v179_v3  ;;  %19 = vst.msk [vmem:[#allocation2 + $0x18] sm:$0xff] %vm15_vm1, %v179_v3  ;;  %v172_v4 = vpack.c.bf16 %v29_v1, %v28_v0  ;;  %v26_v5 = vld [vmem:[%s242_s0 + $0x10] sm:$0xff] }
   0x3   :  { %166 = vmatprep.mubr.msk.f32.mxu0 %vm30_vm0, %v24_v2  ;;  %169 = vmatprep.mubr.msk.f32.mxu1 %vm30_vm0, %v26_v5  ;;  %v25_v6 = vld [vmem:[%s242_s0 + $0x8] sm:$0xff]  ;;  %v27_v7 = vld [vmem:[%s242_s0 + $0x18] sm:$0xff] }
   0x4   :  { %173 = vmatprep.subr.bf16.mxu0 %v172_v4  ;;  %176 = vmatprep.subr.bf16.mxu1 %v172_v4 }
   0x5   :  { %175 = vmatpush3.bf16.msra.mxu0 %v172_v4  ;;  %177 = vmatpush3.bf16.msra.mxu1 %v172_v4 }
   0x8   :  { %167 = vmatmul.mubr.msk.f32.vlgmr.msra.gmra.mrb[0].mxu0 %vm30_vm0, %v25_v6  ;;  %170 = vmatmul.mubr.msk.f32.vlgmr.msra.gmra.mrb[0].mxu1 %vm30_vm0, %v27_v7  ;;  %v21_v8 = vld [vmem:[#allocation2 + $0x8] sm:$0xff]  ;;  %v20_v10 = vld [vmem:[#allocation2] sm:$0xff] }
   0x9   :  { %v23_v9 = vld [vmem:[#allocation2 + $0x18] sm:$0xff]  ;;  %v22_v11 = vld [vmem:[#allocation2 + $0x10] sm:$0xff] }
  0xdb   :  { %v168_v12 = vpop.f32.mrb[0].mxu0  ;;  %v171_v13 = vpop.f32.mrb[0].mxu1 }
  0xdc   :  { %v129_v14 = vadd.f32 %v168_v12, %v21_v8  ;;  %v131_v15 = vadd.f32 %v171_v13, %v23_v9  ;;  %v109_v16 = vpop.f32.mrb[1].mxu0  ;;  %v119_v17 = vpop.f32.mrb[1].mxu1 }
  0xdd   :  { %v128_v18 = vadd.f32 %v109_v16, %v20_v10  ;;  %v130_v19 = vadd.f32 %v119_v17, %v22_v11 }
  0xde   :  { %134 = vst.msk [vmem:[#allocation2 + $0x8] sm:$0xff] %vm15_vm1, %v129_v14  ;;  %136 = vst.msk [vmem:[#allocation2 + $0x18] sm:$0xff] %vm15_vm1, %v131_v15 }
  0xdf   :  { %133 = vst.msk [vmem:[#allocation2] sm:$0xff] %vm15_vm1, %v128_v18  ;;  %135 = vst.msk [vmem:[#allocation2 + $0x10] sm:$0xff] %vm15_vm1, %v130_v19 }
  0xe5   :  { %v141_v20 = vld [vmem:[#allocation2 + $0x8] sm:$0xff]  ;;  %v143_v21 = vld [vmem:[#allocation2 + $0x18] sm:$0xff] }
  0xe6   :  { %145 = vst.msk [vmem:[%s243_s2 + $0x8] sm:$0xff] %vm15_vm1, %v141_v20  ;;  %147 = vst.msk [vmem:[%s243_s2 + $0x18] sm:$0xff] %vm15_vm1, %v143_v21  ;;  %v140_v22 = vld [vmem:[#allocation2] sm:$0xff]  ;;  %v142_v23 = vld [vmem:[#allocation2 + $0x10] sm:$0xff] }
  0xe7   :  { %144 = vst.msk [vmem:[%s243_s2] sm:$0xff] %vm15_vm1, %v140_v22  ;;  %146 = vst.msk [vmem:[%s243_s2 + $0x10] sm:$0xff] %vm15_vm1, %v142_v23 }

// kernel: jvp__.12
= control target key start
LH: loop header
LB: loop body
LE: loop exit
PB: predicated region body
PF: predicated region fallthrough
CT: control target
= control target key end

     0   :  { %vm15_vm0 = vcmask 130048   ;;  %v178_v3 = vmov 0.0   ;;  %s240_s1 = inlined_call_operand.vmem [shape: f32[16,16], index: 1, kind: input, shape index: {}]   ;;  %s241_s0 = inlined_call_operand.vmem [shape: f32[32,16], index: 0, kind: input, shape index: {}]   ;;  %s242_s2 = inlined_call_operand.vmem [shape: f32[32,16], index: 2, kind: output, shape index: {}]  }
   0x1   :  { %v28_v0 = vld [vmem:[%s240_s1] sm:$0xff]  ;;  %v29_v1 = vld [vmem:[%s240_s1 + $0x8] sm:$0xff]  ;;  %17 = vst.msk [vmem:[#allocation2 + $0x8] sm:$0xff] %vm15_vm0, %v178_v3  ;;  %16 = vst.msk [vmem:[#allocation2] sm:$0xff] %vm15_vm0, %v178_v3 }
   0x2   :  { %v24_v2 = vld [vmem:[%s241_s0] sm:$0xff]  ;;  %18 = vst.msk [vmem:[#allocation2 + $0x10] sm:$0xff] %vm15_vm0, %v178_v3  ;;  %19 = vst.msk [vmem:[#allocation2 + $0x18] sm:$0xff] %vm15_vm0, %v178_v3  ;;  %v171_v4 = vpack.c.bf16 %v29_v1, %v28_v0  ;;  %v26_v5 = vld [vmem:[%s241_s0 + $0x10] sm:$0xff] }
   0x3   :  { %165 = vmatprep.mubr.msk.f32.mxu0 %vm15_vm0, %v24_v2  ;;  %168 = vmatprep.mubr.msk.f32.mxu1 %vm15_vm0, %v26_v5  ;;  %v25_v6 = vld [vmem:[%s241_s0 + $0x8] sm:$0xff]  ;;  %v27_v7 = vld [vmem:[%s241_s0 + $0x18] sm:$0xff] }
   0x4   :  { %172 = vmatprep.subr.bf16.mxu0 %v171_v4  ;;  %175 = vmatprep.subr.bf16.mxu1 %v171_v4 }
   0x5   :  { %174 = vmatpush3.bf16.msra.mxu0 %v171_v4  ;;  %176 = vmatpush3.bf16.msra.mxu1 %v171_v4 }
   0x8   :  { %166 = vmatmul.mubr.msk.f32.vlgmr.msra.gmra.mrb[0].mxu0 %vm15_vm0, %v25_v6  ;;  %169 = vmatmul.mubr.msk.f32.vlgmr.msra.gmra.mrb[0].mxu1 %vm15_vm0, %v27_v7  ;;  %v21_v8 = vld [vmem:[#allocation2 + $0x8] sm:$0xff]  ;;  %v20_v10 = vld [vmem:[#allocation2] sm:$0xff] }
   0x9   :  { %v23_v9 = vld [vmem:[#allocation2 + $0x18] sm:$0xff]  ;;  %v22_v11 = vld [vmem:[#allocation2 + $0x10] sm:$0xff] }
  0xdb   :  { %v167_v12 = vpop.f32.mrb[0].mxu0  ;;  %v170_v13 = vpop.f32.mrb[0].mxu1 }
  0xdc   :  { %v129_v14 = vadd.f32 %v167_v12, %v21_v8  ;;  %v131_v15 = vadd.f32 %v170_v13, %v23_v9  ;;  %v109_v16 = vpop.f32.mrb[1].mxu0  ;;  %v119_v17 = vpop.f32.mrb[1].mxu1 }
  0xdd   :  { %v128_v18 = vadd.f32 %v109_v16, %v20_v10  ;;  %v130_v19 = vadd.f32 %v119_v17, %v22_v11 }
  0xde   :  { %133 = vst.msk [vmem:[#allocation2 + $0x8] sm:$0xff] %vm15_vm0, %v129_v14  ;;  %135 = vst.msk [vmem:[#allocation2 + $0x18] sm:$0xff] %vm15_vm0, %v131_v15 }
  0xdf   :  { %132 = vst.msk [vmem:[#allocation2] sm:$0xff] %vm15_vm0, %v128_v18  ;;  %134 = vst.msk [vmem:[#allocation2 + $0x10] sm:$0xff] %vm15_vm0, %v130_v19 }
  0xe5   :  { %v140_v20 = vld [vmem:[#allocation2 + $0x8] sm:$0xff]  ;;  %v142_v21 = vld [vmem:[#allocation2 + $0x18] sm:$0xff] }
  0xe6   :  { %144 = vst.msk [vmem:[%s242_s2 + $0x8] sm:$0xff] %vm15_vm0, %v140_v20  ;;  %146 = vst.msk [vmem:[%s242_s2 + $0x18] sm:$0xff] %vm15_vm0, %v142_v21  ;;  %v139_v22 = vld [vmem:[#allocation2] sm:$0xff]  ;;  %v141_v23 = vld [vmem:[#allocation2 + $0x10] sm:$0xff] }
  0xe7   :  { %143 = vst.msk [vmem:[%s242_s2] sm:$0xff] %vm15_vm0, %v139_v22  ;;  %145 = vst.msk [vmem:[%s242_s2 + $0x10] sm:$0xff] %vm15_vm0, %v141_v23 }

// kernel: jvp__.15
= control target key start
LH: loop header
LB: loop body
LE: loop exit
PB: predicated region body
PF: predicated region fallthrough
CT: control target
= control target key end

     0   :  { %vm32_vm0 = vcmask 261120   ;;  %vm15_vm1 = vcmask 31744   ;;  %v193_v3 = vmov 0.0   ;;  %s261_s1 = inlined_call_operand.vmem [shape: f32[32,4], index: 1, kind: input, shape index: {}]   ;;  %s262_s0 = inlined_call_operand.vmem [shape: f32[32,32], index: 0, kind: input, shape index: {}]   ;;  %s263_s2 = inlined_call_operand.vmem [shape: f32[32,4], index: 2, kind: output, shape index: {}]  }
   0x1   :  { %v28_v0 = vld [vmem:[%s261_s1] sm:$0xff]  ;;  %v29_v1 = vld [vmem:[%s261_s1 + $0x8] sm:$0xff]  ;;  %v30_v2 = vld [vmem:[%s261_s1 + $0x10] sm:$0xff]  ;;  %17 = vst.msk [vmem:[#allocation2 + $0x8] sm:$0xff] %vm15_vm1, %v193_v3 }
   0x2   :  { %16 = vst.msk [vmem:[#allocation2] sm:$0xff] %vm15_vm1, %v193_v3  ;;  %18 = vst.msk [vmem:[#allocation2 + $0x10] sm:$0xff] %vm15_vm1, %v193_v3  ;;  %v180_v4 = vpack.c.bf16 %v29_v1, %v28_v0  ;;  %v31_v5 = vld [vmem:[%s261_s1 + $0x18] sm:$0xff]  ;;  %v24_v6 = vld [vmem:[%s262_s0] sm:$0xff] }
   0x3   :  { %19 = vst.msk [vmem:[#allocation2 + $0x18] sm:$0xff] %vm15_vm1, %v193_v3  ;;  %v26_v7 = vld [vmem:[%s262_s0 + $0x10] sm:$0xff]  ;;  %v184_v8 = vpack.c.bf16 %v31_v5, %v30_v2  ;;  %174 = vmatprep.mubr.msk.f32.mxu0 %vm32_vm0, %v24_v6  ;;  %v25_v9 = vld [vmem:[%s262_s0 + $0x8] sm:$0xff]  ;;  %v27_v10 = vld [vmem:[%s262_s0 + $0x18] sm:$0xff] }
   0x4   :  { %177 = vmatprep.mubr.msk.f32.mxu1 %vm32_vm0, %v26_v7  ;;  %181 = vmatprep.subr.bf16.mxu0 %v180_v4 }
   0x5   :  { %188 = vmatprep.subr.bf16.mxu1 %v180_v4  ;;  %183 = vmatpush3.bf16.msra.mxu0 %v180_v4 }
   0x6   :  { %190 = vmatpush3.bf16.msra.mxu1 %v180_v4  ;;  %185 = vmatprep.subr.bf16.mxu0 %v184_v8 }
   0x7   :  { %189 = vmatprep.subr.bf16.mxu1 %v184_v8 }
   0x8   :  { %v21_v11 = vld [vmem:[#allocation2 + $0x8] sm:$0xff] }
   0x9   :  { %187 = vmatpush3.bf16.msra.mxu0 %v184_v8  ;;  %v20_v13 = vld [vmem:[#allocation2] sm:$0xff]  ;;  %v22_v14 = vld [vmem:[#allocation2 + $0x10] sm:$0xff] }
   0xa   :  { %191 = vmatpush3.bf16.msra.mxu1 %v184_v8  ;;  %v23_v12 = vld [vmem:[#allocation2 + $0x18] sm:$0xff] }
   0xc   :  { %175 = vmatmul.mubr.msk.f32.vlgmr.msra.gmra.mrb[0].mxu0 %vm32_vm0, %v25_v9 }
   0xd   :  { %178 = vmatmul.mubr.msk.f32.vlgmr.msra.gmra.mrb[0].mxu1 %vm32_vm0, %v27_v10 }
  0xdf   :  { %v176_v15 = vpop.f32.mrb[0].mxu0 }
  0xe0   :  { %v179_v16 = vpop.f32.mrb[0].mxu1  ;;  %v131_v17 = vadd.f32 %v176_v15, %v21_v11  ;;  %v111_v19 = vpop.f32.mrb[1].mxu0 }
  0xe1   :  { %v133_v18 = vadd.f32 %v179_v16, %v23_v12  ;;  %v121_v20 = vpop.f32.mrb[1].mxu1  ;;  %v130_v21 = vadd.f32 %v111_v19, %v20_v13 }
  0xe2   :  { %v132_v22 = vadd.f32 %v121_v20, %v22_v14  ;;  %136 = vst.msk [vmem:[#allocation2 + $0x8] sm:$0xff] %vm15_vm1, %v131_v17 }
  0xe3   :  { %138 = vst.msk [vmem:[#allocation2 + $0x18] sm:$0xff] %vm15_vm1, %v133_v18  ;;  %135 = vst.msk [vmem:[#allocation2] sm:$0xff] %vm15_vm1, %v130_v21 }
  0xe4   :  { %137 = vst.msk [vmem:[#allocation2 + $0x10] sm:$0xff] %vm15_vm1, %v132_v22 }
  0xe9   :  { %v143_v23 = vld [vmem:[#allocation2 + $0x8] sm:$0xff] }
  0xea   :  { %v145_v24 = vld [vmem:[#allocation2 + $0x18] sm:$0xff]  ;;  %147 = vst.msk [vmem:[%s263_s2 + $0x8] sm:$0xff] %vm15_vm1, %v143_v23  ;;  %v142_v25 = vld [vmem:[#allocation2] sm:$0xff] }
  0xeb   :  { %149 = vst.msk [vmem:[%s263_s2 + $0x18] sm:$0xff] %vm15_vm1, %v145_v24  ;;  %v144_v26 = vld [vmem:[#allocation2 + $0x10] sm:$0xff]  ;;  %146 = vst.msk [vmem:[%s263_s2] sm:$0xff] %vm15_vm1, %v142_v25 }
  0xec   :  { %148 = vst.msk [vmem:[%s263_s2 + $0x10] sm:$0xff] %vm15_vm1, %v144_v26 }

// kernel: jvp__.16
= control target key start
LH: loop header
LB: loop body
LE: loop exit
PB: predicated region body
PF: predicated region fallthrough
CT: control target
= control target key end

     0   :  { %vm12_vm0 = vcmask 31744   ;;  %s131_s0 = inlined_call_operand.vmem [shape: f32[32,4], index: 0, kind: input, shape index: {}]   ;;  %s132_s1 = inlined_call_operand.vmem [shape: f32[32,4], index: 1, kind: output, shape index: {}]  }
   0x1   :  { %v8_v0 = vld [vmem:[%s131_s0] sm:$0xff]  ;;  %v10_v1 = vld [vmem:[%s131_s0 + $0x10] sm:$0xff]  ;;  %v9_v2 = vld [vmem:[%s131_s0 + $0x8] sm:$0xff] }
   0x2   :  { %v13_v3 = vsel %vm12_vm0, %v8_v0, -inf  ;;  %v19_v4 = vsel %vm12_vm0, %v10_v1, -inf  ;;  %v11_v5 = vld [vmem:[%s131_s0 + $0x18] sm:$0xff]  ;;  %v16_v6 = vsel %vm12_vm0, %v9_v2, -inf }
   0x3   :  { %14 = vmax.xlane.f32.xlu0 %v13_v3  ;;  %20 = vmax.xlane.f32.xlu1 %v19_v4  ;;  %v22_v7 = vsel %vm12_vm0, %v11_v5, -inf }
   0x7   :  { %17 = vmax.xlane.f32.xlu0 %v16_v6  ;;  %23 = vmax.xlane.f32.xlu1 %v22_v7 }
  0x90   :  { %v15_v8 = vpop.xlane.xlu0 %14  ;;  %v21_v9 = vpop.xlane.xlu1 %20 }
  0x91   :  { %v25_v10 = vsub.f32 %v8_v0, %v15_v8  ;;  %v27_v11 = vsub.f32 %v10_v1, %v21_v9 }
  0x93   :  { %v29_v12 = vmul.f32 1.442695, %v25_v10  ;;  %v33_v13 = vmul.f32 1.442695, %v27_v11 }
  0x94   :  { %v18_v14 = vpop.xlane.xlu0 %17  ;;  %v24_v15 = vpop.xlane.xlu1 %23 }
  0x95   :  { %69 = vpow2.f32 %v29_v12  ;;  %v26_v16 = vsub.f32 %v9_v2, %v18_v14  ;;  %v28_v17 = vsub.f32 %v11_v5, %v24_v15 }
  0x96   :  { %71 = vpow2.f32 %v33_v13 }
  0x97   :  { %v31_v18 = vmul.f32 1.442695, %v26_v16  ;;  %v35_v19 = vmul.f32 1.442695, %v28_v17 }
  0x99   :  { %73 = vpow2.f32 %v31_v18 }
  0x9a   :  { %75 = vpow2.f32 %v35_v19 }
  0x9f   :  { %v70_v20 = vpop.eup %69 }
  0xa0   :  { %v72_v21 = vpop.eup %71  ;;  %v37_v22 = vsel %vm12_vm0, %v70_v20, 0.0 }
  0xa1   :  { %38 = vadd.xlane.f32.xlu0 %v37_v22  ;;  %v43_v23 = vsel %vm12_vm0, %v72_v21, 0.0 }
  0xa3   :  { %v74_v24 = vpop.eup %73 }
  0xa4   :  { %v76_v25 = vpop.eup %75  ;;  %v40_v26 = vsel %vm12_vm0, %v74_v24, 0.0 }
  0xa5   :  { %44 = vadd.xlane.f32.xlu0 %v43_v23  ;;  %41 = vadd.xlane.f32.xlu1 %v40_v26  ;;  %v46_v27 = vsel %vm12_vm0, %v76_v25, 0.0 }
  0xa9   :  { %47 = vadd.xlane.f32.xlu1 %v46_v27 }
 0x12e   :  { %v39_v28 = vpop.xlane.xlu0 %38 }
 0x12f   :  { %77 = vlog2.f32 %v39_v28 }
 0x132   :  { %v42_v29 = vpop.xlane.xlu1 %41  ;;  %v45_v30 = vpop.xlane.xlu0 %44 }
 0x133   :  { %79 = vlog2.f32 %v42_v29 }
 0x134   :  { %81 = vlog2.f32 %v45_v30 }
 0x136   :  { %v48_v31 = vpop.xlane.xlu1 %47 }
 0x137   :  { %83 = vlog2.f32 %v48_v31 }
 0x139   :  { %v78_v32 = vpop.eup %77 }
 0x13a   :  { %v50_v33 = vmul.f32 0.6931472, %v78_v32 }
 0x13c   :  { %v57_v34 = vsub.f32 %v25_v10, %v50_v33 }
 0x13d   :  { %v80_v35 = vpop.eup %79 }
 0x13e   :  { %v82_v36 = vpop.eup %81  ;;  %61 = vst.msk [vmem:[%s132_s1] sm:$0xff] %vm12_vm0, %v57_v34  ;;  %v52_v37 = vmul.f32 0.6931472, %v80_v35 }
 0x13f   :  { %v54_v38 = vmul.f32 0.6931472, %v82_v36 }
 0x140   :  { %v58_v39 = vsub.f32 %v26_v16, %v52_v37 }
 0x141   :  { %v84_v40 = vpop.eup %83  ;;  %v59_v41 = vsub.f32 %v27_v11, %v54_v38 }
 0x142   :  { %62 = vst.msk [vmem:[%s132_s1 + $0x8] sm:$0xff] %vm12_vm0, %v58_v39  ;;  %v56_v42 = vmul.f32 0.6931472, %v84_v40 }
 0x143   :  { %63 = vst.msk [vmem:[%s132_s1 + $0x10] sm:$0xff] %vm12_vm0, %v59_v41 }
 0x144   :  { %v60_v43 = vsub.f32 %v28_v17, %v56_v42 }
 0x146   :  { %64 = vst.msk [vmem:[%s132_s1 + $0x18] sm:$0xff] %vm12_vm0, %v60_v43 }

</bundles_post_ra>
